<compile_context>
chip_gen: v7x
topology: tpu7x:2x2x1
jax: 0.10.0
libtpu: 0.0.40
codegen_flags: <defaults>
</compile_context>

<pallas_src>
import functools

import jax
import jax.numpy as jnp
from jax.experimental import pallas as pl
from jax.experimental.pallas import tpu as pltpu

LANE = 128     # TPU lane width; all feature dims padded to this
SUBLANE = 8    # f32 sublane quantum; batch padded to a multiple of this


def cell_seq_kernel(a0_ref, x_ref, w1a_ref, w1x_ref, b1_ref, w2_ref, b2_ref,
                    a_out_ref, y_out_ref, a_carry, xw_buf):
    """One grid step == TB time steps of the recurrence.

    a0_ref:   (Bp, F)      initial hidden state (used only at grid step 0)
    x_ref:    (TB, Bp, F)  inputs for this block of time steps (streamed)
    w1a_ref:  (F, F)       rows of w1 that multiply the hidden state
    w1x_ref:  (F, F)       rows of w1 that multiply the input
    b1_ref:   (1, F)
    w2_ref:   (F, F)
    b2_ref:   (1, F)
    a_out_ref:(TB, Bp, F)  per-step hidden-state output (lane-dense)
    y_out_ref:(TB, Bp, F)  per-step Y output (lane-dense)
    a_carry:  (Bp, F)      VMEM scratch carrying hidden state across grid steps
    xw_buf:   (TB, Bp, F)  VMEM scratch holding the hoisted input projection
    """
    g = pl.program_id(0)

    @pl.when(g == 0)
    def _():
        a_carry[...] = a0_ref[...]

    TB, Bp, F = x_ref.shape

    # --- Hoisted non-recurrent input projection: one big MXU matmul -------
    # xw[t] = x[t] @ w1x + b1 for all TB steps at once (M = TB*Bp rows).
    x_flat = x_ref[...].reshape(TB * Bp, F)
    xw = jnp.dot(x_flat, w1x_ref[...], preferred_element_type=jnp.float32)
    xw = xw + b1_ref[...]                    # bias broadcast hoisted out of loop
    xw_buf[...] = xw.reshape(TB, Bp, F)

    # --- Sequential recurrence: only a_prev @ w1a is on the critical path --
    def step(t, a_prev):
        h = jnp.dot(a_prev, w1a_ref[...],
                    preferred_element_type=jnp.float32) + xw_buf[t]
        # activation = Identity (module default)
        a_out_ref[t] = h
        return h

    a_last = jax.lax.fori_loop(0, TB, step, a_carry[...], unroll=True)
    a_carry[...] = a_last                    # carry to next grid iteration

    # --- Hoisted output projection: one big MXU matmul over the block -----
    a_flat = a_out_ref[...].reshape(TB * Bp, F)
    y = jnp.dot(a_flat, w2_ref[...], preferred_element_type=jnp.float32)
    y = y + b2_ref[...]
    # activation_y = Identity (module default)
    y_out_ref[...] = y.reshape(TB, Bp, F)


def _pad_to(arr, shape):
    return jnp.pad(arr, [(0, s - d) for d, s in zip(arr.shape, shape)])


@jax.jit
def cell_forward_seq(a0, x_seq, w1, b1, w2, b2):
    """Run the cell over a sequence in one fused, time-blocked pallas_call.

    a0:    (B, act_dim)          initial hidden state
    x_seq: (T, B, input_dim)     inputs per time step
    w1:    (act_dim+input_dim, act_dim),  b1: (1, act_dim) or (act_dim,)
    w2:    (act_dim, output_dim),         b2: (1, output_dim) or (output_dim,)
    Returns (a_seq, y_seq) with shapes (T, B, act_dim), (T, B, output_dim).
    """
    T, B, input_dim = x_seq.shape
    act_dim = a0.shape[1]
    output_dim = w2.shape[1]
    assert max(act_dim, input_dim, output_dim) <= LANE  # single 128-lane slab

    Bp = -(-B // SUBLANE) * SUBLANE
    F = LANE
    TB = min(T, 16)                         # time steps per grid iteration
    Tp = -(-T // TB) * TB                   # pad T to a multiple of TB

    # Zero-pad everything to lane-dense slabs (layout plumbing only).
    a0_p = _pad_to(a0, (Bp, F))
    x_p = _pad_to(x_seq, (Tp, Bp, F))
    w1a_p = _pad_to(w1[:act_dim, :], (F, F))   # hidden-state rows of w1
    w1x_p = _pad_to(w1[act_dim:, :], (F, F))   # input rows of w1
    b1_p = _pad_to(b1.reshape(1, -1), (1, F))
    w2_p = _pad_to(w2, (F, F))
    b2_p = _pad_to(b2.reshape(1, -1), (1, F))

    flops = 3 * 2 * Tp * Bp * F * F
    bytes_accessed = 4 * (a0_p.size + x_p.size + w1a_p.size + w1x_p.size +
                          b1_p.size + w2_p.size + b2_p.size + 2 * Tp * Bp * F)

    a_out, y_out = pl.pallas_call(
        cell_seq_kernel,
        out_shape=(
            jax.ShapeDtypeStruct((Tp, Bp, F), jnp.float32),
            jax.ShapeDtypeStruct((Tp, Bp, F), jnp.float32),
        ),
        grid=(Tp // TB,),
        in_specs=[
            pl.BlockSpec((Bp, F), lambda g: (0, 0)),         # a0  (resident)
            pl.BlockSpec((TB, Bp, F), lambda g: (g, 0, 0)),  # x block (streamed)
            pl.BlockSpec((F, F), lambda g: (0, 0)),          # w1a (resident)
            pl.BlockSpec((F, F), lambda g: (0, 0)),          # w1x (resident)
            pl.BlockSpec((1, F), lambda g: (0, 0)),          # b1  (resident)
            pl.BlockSpec((F, F), lambda g: (0, 0)),          # w2  (resident)
            pl.BlockSpec((1, F), lambda g: (0, 0)),          # b2  (resident)
        ],
        out_specs=(
            pl.BlockSpec((TB, Bp, F), lambda g: (g, 0, 0)),
            pl.BlockSpec((TB, Bp, F), lambda g: (g, 0, 0)),
        ),
        scratch_shapes=[
            pltpu.VMEM((Bp, F), jnp.float32),       # hidden-state carry
            pltpu.VMEM((TB, Bp, F), jnp.float32),   # hoisted x @ w1x + b1
        ],
        compiler_params=pltpu.CompilerParams(
            dimension_semantics=("arbitrary",)),     # sequential carry over time
        cost_estimate=pl.CostEstimate(
            flops=flops, transcendentals=0, bytes_accessed=bytes_accessed),
    )(a0_p, x_p, w1a_p, w1x_p, b1_p, w2_p, b2_p)

    return a_out[:T, :B, :act_dim], y_out[:T, :B, :output_dim]


def cell_forward(a, x, w1, b1, w2, b2):
    """Single-step forward matching Cell.forward(a, X) exactly."""
    a_seq, y_seq = cell_forward_seq(a, x[None], w1, b1, w2, b2)
    return a_seq[0], y_seq[0]


# ----------------------------- pure-JAX references -----------------------------

def cell_step_ref(a, x, w1, b1, w2, b2):
    cat = jnp.concatenate([a, x], axis=1)
    h = cat @ w1 + b1
    y = h @ w2 + b2
    return h, y


def cell_seq_ref(a0, x_seq, w1, b1, w2, b2):
    def step(a, x):
        h, y = cell_step_ref(a, x, w1, b1, w2, b2)
        return h, (h, y)
    _, (a_seq, y_seq) = jax.lax.scan(step, a0, x_seq)
    return a_seq, y_seq


if __name__ == "__main__":
    # Module config: Cell(input_dim=16, output_dim=32) -> act_dim = input_dim.
    input_dim = 16
    output_dim = 32
    act_dim = input_dim
    batch = 8
    seq_len = 32     # -> 2 grid iterations of 16 time steps each

    key = jax.random.PRNGKey(0)
    k_a, k_x, k_w1, k_b1, k_w2, k_b2 = jax.random.split(key, 6)

    # PyTorch-like uniform fan-in init, weights stored (in_features, out_features).
    lim1 = 1.0 / jnp.sqrt(act_dim + input_dim)
    w1 = jax.random.uniform(k_w1, (act_dim + input_dim, act_dim),
                            jnp.float32, -lim1, lim1)
    b1 = jax.random.uniform(k_b1, (1, act_dim), jnp.float32, -lim1, lim1)

    lim2 = 1.0 / jnp.sqrt(act_dim)
    w2 = jax.random.uniform(k_w2, (act_dim, output_dim),
                            jnp.float32, -lim2, lim2)
    b2 = jax.random.uniform(k_b2, (1, output_dim), jnp.float32, -lim2, lim2)

    a0 = jax.random.normal(k_a, (batch, act_dim), jnp.float32)
    x_seq = jax.random.normal(k_x, (seq_len, batch, input_dim), jnp.float32)

    # Fused multi-step recurrence (one time-blocked pallas_call).
    a_seq, y_seq = cell_forward_seq(a0, x_seq, w1, b1, w2, b2)
    jax.block_until_ready((a_seq, y_seq))

    a_seq_ref, y_seq_ref = cell_seq_ref(a0, x_seq, w1, b1, w2, b2)
    assert jnp.allclose(a_seq, a_seq_ref, atol=5e-4, rtol=5e-4), "a_seq mismatch"
    assert jnp.allclose(y_seq, y_seq_ref, atol=5e-4, rtol=5e-4), "y_seq mismatch"

    # Single-step forward, exactly the module's forward(a, X).
    a_new, y = cell_forward(a0, x_seq[0], w1, b1, w2, b2)
    jax.block_until_ready((a_new, y))

    a_new_ref, y_ref = cell_step_ref(a0, x_seq[0], w1, b1, w2, b2)
    assert jnp.allclose(a_new, a_new_ref, atol=1e-4, rtol=1e-4), "a mismatch"
    assert jnp.allclose(y, y_ref, atol=1e-4, rtol=1e-4), "Y mismatch"

    print("KERNEL_OK")
</pallas_src>

<mosaic_0001>
module attributes {stable_mosaic.version = 11 : i64} {
  func.func @cell_seq_kernel(%arg0: i32, %arg1: memref<8x128xf32, #tpu.memory_space<vmem>>, %arg2: memref<16x8x128xf32, #tpu.memory_space<vmem>>, %arg3: memref<128x128xf32, #tpu.memory_space<vmem>>, %arg4: memref<128x128xf32, #tpu.memory_space<vmem>>, %arg5: memref<1x128xf32, #tpu.memory_space<vmem>>, %arg6: memref<128x128xf32, #tpu.memory_space<vmem>>, %arg7: memref<1x128xf32, #tpu.memory_space<vmem>>, %arg8: memref<16x8x128xf32, #tpu.memory_space<vmem>>, %arg9: memref<16x8x128xf32, #tpu.memory_space<vmem>>, %arg10: memref<8x128xf32, #tpu.memory_space<vmem>>, %arg11: memref<16x8x128xf32, #tpu.memory_space<vmem>>) attributes {dimension_semantics = [#tpu.dimension_semantics<arbitrary>], iteration_bounds = array<i64: 2>, scalar_prefetch = 0 : i64, scratch_operands = 2 : i64, tpu.core_type = #tpu.core_type<tc>, window_params = [{pipeline_mode = #tpu.pipeline_mode<synchronous>, transform_indices = @transform_0, window_bounds = array<i64: 8, 128>}, {transform_indices = @transform_1, window_bounds = array<i64: 16, 8, 128>}, {pipeline_mode = #tpu.pipeline_mode<synchronous>, transform_indices = @transform_2, window_bounds = array<i64: 128, 128>}, {pipeline_mode = #tpu.pipeline_mode<synchronous>, transform_indices = @transform_3, window_bounds = array<i64: 128, 128>}, {pipeline_mode = #tpu.pipeline_mode<synchronous>, transform_indices = @transform_4, window_bounds = array<i64: 1, 128>}, {pipeline_mode = #tpu.pipeline_mode<synchronous>, transform_indices = @transform_5, window_bounds = array<i64: 128, 128>}, {pipeline_mode = #tpu.pipeline_mode<synchronous>, transform_indices = @transform_6, window_bounds = array<i64: 1, 128>}, {transform_indices = @transform_7, window_bounds = array<i64: 16, 8, 128>}, {transform_indices = @transform_8, window_bounds = array<i64: 16, 8, 128>}]} {
    %c0_i32 = arith.constant 0 : i32
    %0 = arith.cmpi eq, %arg0, %c0_i32 : i32
    %1 = arith.extui %0 : i1 to i32
    %c0_i32_0 = arith.constant 0 : i32
    %2 = arith.cmpi ne, %1, %c0_i32_0 : i32
    scf.if %2 {
      %c0_138 = arith.constant 0 : index
      %c0_139 = arith.constant 0 : index
      %183 = vector.load %arg1[%c0_138, %c0_139] : memref<8x128xf32, #tpu.memory_space<vmem>>, vector<8x128xf32>
      %c0_140 = arith.constant 0 : index
      %c0_141 = arith.constant 0 : index
      %184 = vector.load %arg10[%c0_140, %c0_141] : memref<8x128xf32, #tpu.memory_space<vmem>>, vector<8x128xf32>
      tpu.vector_store %arg10[%c0_140, %c0_141], %183 {strides = array<i32>} : memref<8x128xf32, #tpu.memory_space<vmem>>, vector<8x128xf32>,
    } else {
    }
    %c0 = arith.constant 0 : index
    %c0_1 = arith.constant 0 : index
    %c0_2 = arith.constant 0 : index
    %3 = vector.load %arg2[%c0, %c0_1, %c0_2] : memref<16x8x128xf32, #tpu.memory_space<vmem>>, vector<16x8x128xf32>
    %4 = vector.shape_cast %3 : vector<16x8x128xf32> to vector<128x128xf32>
    %c0_3 = arith.constant 0 : index
    %c0_4 = arith.constant 0 : index
    %5 = vector.load %arg4[%c0_3, %c0_4] : memref<128x128xf32, #tpu.memory_space<vmem>>, vector<128x128xf32>
    %cst = arith.constant dense<0.000000e+00> : vector<128x128xf32>
    %6 = tpu.matmul %4, %5, %cst {dimension_numbers = #tpu.dot_dimension_numbers<[1], [0], [0], [1], [0, 0, 1, 1], [], []>} : vector<128x128xf32>, vector<128x128xf32>, vector<128x128xf32> -> vector<128x128xf32>
    %c0_5 = arith.constant 0 : index
    %c0_6 = arith.constant 0 : index
    %7 = vector.load %arg5[%c0_5, %c0_6] : memref<1x128xf32, #tpu.memory_space<vmem>>, vector<1x128xf32>
    %8 = vector.broadcast %7 : vector<1x128xf32> to vector<128x128xf32>
    %9 = arith.addf %6, %8 : vector<128x128xf32>
    %10 = vector.shape_cast %9 : vector<128x128xf32> to vector<16x8x128xf32>
    %c0_7 = arith.constant 0 : index
    %c0_8 = arith.constant 0 : index
    %c0_9 = arith.constant 0 : index
    %11 = vector.load %arg11[%c0_7, %c0_8, %c0_9] : memref<16x8x128xf32, #tpu.memory_space<vmem>>, vector<16x8x128xf32>
    tpu.vector_store %arg11[%c0_7, %c0_8, %c0_9], %10 {strides = array<i32>} : memref<16x8x128xf32, #tpu.memory_space<vmem>>, vector<16x8x128xf32>,
    %c0_10 = arith.constant 0 : index
    %c0_11 = arith.constant 0 : index
    %12 = vector.load %arg10[%c0_10, %c0_11] : memref<8x128xf32, #tpu.memory_space<vmem>>, vector<8x128xf32>
    %c0_i32_12 = arith.constant 0 : i32
    %c0_13 = arith.constant 0 : index
    %c0_14 = arith.constant 0 : index
    %13 = vector.load %arg3[%c0_13, %c0_14] : memref<128x128xf32, #tpu.memory_space<vmem>>, vector<128x128xf32>
    %cst_15 = arith.constant dense<0.000000e+00> : vector<8x128xf32>
    %14 = tpu.matmul %12, %13, %cst_15 {dimension_numbers = #tpu.dot_dimension_numbers<[1], [0], [0], [1], [0, 0, 1, 1], [], []>} : vector<8x128xf32>, vector<128x128xf32>, vector<8x128xf32> -> vector<8x128xf32>
    %15 = arith.index_cast %c0_i32_12 : i32 to index
    %c0_16 = arith.constant 0 : index
    %c0_17 = arith.constant 0 : index
    %16 = vector.load %arg11[%15, %c0_16, %c0_17] : memref<16x8x128xf32, #tpu.memory_space<vmem>>, vector<1x8x128xf32>
    %17 = vector.shape_cast %16 : vector<1x8x128xf32> to vector<8x128xf32>
    %18 = arith.addf %14, %17 : vector<8x128xf32>
    %19 = arith.index_cast %c0_i32_12 : i32 to index
    %c0_18 = arith.constant 0 : index
    %c0_19 = arith.constant 0 : index
    %20 = vector.load %arg8[%19, %c0_18, %c0_19] : memref<16x8x128xf32, #tpu.memory_space<vmem>>, vector<1x8x128xf32>
    %21 = vector.shape_cast %20 : vector<1x8x128xf32> to vector<8x128xf32>
    %22 = vector.shape_cast %18 : vector<8x128xf32> to vector<1x8x128xf32>
    tpu.vector_store %arg8[%19, %c0_18, %c0_19], %22 {strides = array<i32>} : memref<16x8x128xf32, #tpu.memory_space<vmem>>, vector<1x8x128xf32>,
    %c1_i32 = arith.constant 1 : i32
    %c0_20 = arith.constant 0 : index
    %c0_21 = arith.constant 0 : index
    %23 = vector.load %arg3[%c0_20, %c0_21] : memref<128x128xf32, #tpu.memory_space<vmem>>, vector<128x128xf32>
    %cst_22 = arith.constant dense<0.000000e+00> : vector<8x128xf32>
    %24 = tpu.matmul %18, %23, %cst_22 {dimension_numbers = #tpu.dot_dimension_numbers<[1], [0], [0], [1], [0, 0, 1, 1], [], []>} : vector<8x128xf32>, vector<128x128xf32>, vector<8x128xf32> -> vector<8x128xf32>
    %25 = arith.index_cast %c1_i32 : i32 to index
    %c0_23 = arith.constant 0 : index
    %c0_24 = arith.constant 0 : index
    %26 = vector.load %arg11[%25, %c0_23, %c0_24] : memref<16x8x128xf32, #tpu.memory_space<vmem>>, vector<1x8x128xf32>
    %27 = vector.shape_cast %26 : vector<1x8x128xf32> to vector<8x128xf32>
    %28 = arith.addf %24, %27 : vector<8x128xf32>
    %29 = arith.index_cast %c1_i32 : i32 to index
    %c0_25 = arith.constant 0 : index
    %c0_26 = arith.constant 0 : index
    %30 = vector.load %arg8[%29, %c0_25, %c0_26] : memref<16x8x128xf32, #tpu.memory_space<vmem>>, vector<1x8x128xf32>
    %31 = vector.shape_cast %30 : vector<1x8x128xf32> to vector<8x128xf32>
    %32 = vector.shape_cast %28 : vector<8x128xf32> to vector<1x8x128xf32>
    tpu.vector_store %arg8[%29, %c0_25, %c0_26], %32 {strides = array<i32>} : memref<16x8x128xf32, #tpu.memory_space<vmem>>, vector<1x8x128xf32>,
    %c2_i32 = arith.constant 2 : i32
    %c0_27 = arith.constant 0 : index
    %c0_28 = arith.constant 0 : index
    %33 = vector.load %arg3[%c0_27, %c0_28] : memref<128x128xf32, #tpu.memory_space<vmem>>, vector<128x128xf32>
    %cst_29 = arith.constant dense<0.000000e+00> : vector<8x128xf32>
    %34 = tpu.matmul %28, %33, %cst_29 {dimension_numbers = #tpu.dot_dimension_numbers<[1], [0], [0], [1], [0, 0, 1, 1], [], []>} : vector<8x128xf32>, vector<128x128xf32>, vector<8x128xf32> -> vector<8x128xf32>
    %35 = arith.index_cast %c2_i32 : i32 to index
    %c0_30 = arith.constant 0 : index
    %c0_31 = arith.constant 0 : index
    %36 = vector.load %arg11[%35, %c0_30, %c0_31] : memref<16x8x128xf32, #tpu.memory_space<vmem>>, vector<1x8x128xf32>
    %37 = vector.shape_cast %36 : vector<1x8x128xf32> to vector<8x128xf32>
    %38 = arith.addf %34, %37 : vector<8x128xf32>
    %39 = arith.index_cast %c2_i32 : i32 to index
    %c0_32 = arith.constant 0 : index
    %c0_33 = arith.constant 0 : index
    %40 = vector.load %arg8[%39, %c0_32, %c0_33] : memref<16x8x128xf32, #tpu.memory_space<vmem>>, vector<1x8x128xf32>
    %41 = vector.shape_cast %40 : vector<1x8x128xf32> to vector<8x128xf32>
    %42 = vector.shape_cast %38 : vector<8x128xf32> to vector<1x8x128xf32>
    tpu.vector_store %arg8[%39, %c0_32, %c0_33], %42 {strides = array<i32>} : memref<16x8x128xf32, #tpu.memory_space<vmem>>, vector<1x8x128xf32>,
    %c3_i32 = arith.constant 3 : i32
    %c0_34 = arith.constant 0 : index
    %c0_35 = arith.constant 0 : index
    %43 = vector.load %arg3[%c0_34, %c0_35] : memref<128x128xf32, #tpu.memory_space<vmem>>, vector<128x128xf32>
    %cst_36 = arith.constant dense<0.000000e+00> : vector<8x128xf32>
    %44 = tpu.matmul %38, %43, %cst_36 {dimension_numbers = #tpu.dot_dimension_numbers<[1], [0], [0], [1], [0, 0, 1, 1], [], []>} : vector<8x128xf32>, vector<128x128xf32>, vector<8x128xf32> -> vector<8x128xf32>
    %45 = arith.index_cast %c3_i32 : i32 to index
    %c0_37 = arith.constant 0 : index
    %c0_38 = arith.constant 0 : index
    %46 = vector.load %arg11[%45, %c0_37, %c0_38] : memref<16x8x128xf32, #tpu.memory_space<vmem>>, vector<1x8x128xf32>
    %47 = vector.shape_cast %46 : vector<1x8x128xf32> to vector<8x128xf32>
    %48 = arith.addf %44, %47 : vector<8x128xf32>
    %49 = arith.index_cast %c3_i32 : i32 to index
    %c0_39 = arith.constant 0 : index
    %c0_40 = arith.constant 0 : index
    %50 = vector.load %arg8[%49, %c0_39, %c0_40] : memref<16x8x128xf32, #tpu.memory_space<vmem>>, vector<1x8x128xf32>
    %51 = vector.shape_cast %50 : vector<1x8x128xf32> to vector<8x128xf32>
    %52 = vector.shape_cast %48 : vector<8x128xf32> to vector<1x8x128xf32>
    tpu.vector_store %arg8[%49, %c0_39, %c0_40], %52 {strides = array<i32>} : memref<16x8x128xf32, #tpu.memory_space<vmem>>, vector<1x8x128xf32>,
    %c4_i32 = arith.constant 4 : i32
    %c0_41 = arith.constant 0 : index
    %c0_42 = arith.constant 0 : index
    %53 = vector.load %arg3[%c0_41, %c0_42] : memref<128x128xf32, #tpu.memory_space<vmem>>, vector<128x128xf32>
    %cst_43 = arith.constant dense<0.000000e+00> : vector<8x128xf32>
    %54 = tpu.matmul %48, %53, %cst_43 {dimension_numbers = #tpu.dot_dimension_numbers<[1], [0], [0], [1], [0, 0, 1, 1], [], []>} : vector<8x128xf32>, vector<128x128xf32>, vector<8x128xf32> -> vector<8x128xf32>
    %55 = arith.index_cast %c4_i32 : i32 to index
    %c0_44 = arith.constant 0 : index
    %c0_45 = arith.constant 0 : index
    %56 = vector.load %arg11[%55, %c0_44, %c0_45] : memref<16x8x128xf32, #tpu.memory_space<vmem>>, vector<1x8x128xf32>
    %57 = vector.shape_cast %56 : vector<1x8x128xf32> to vector<8x128xf32>
    %58 = arith.addf %54, %57 : vector<8x128xf32>
    %59 = arith.index_cast %c4_i32 : i32 to index
    %c0_46 = arith.constant 0 : index
    %c0_47 = arith.constant 0 : index
    %60 = vector.load %arg8[%59, %c0_46, %c0_47] : memref<16x8x128xf32, #tpu.memory_space<vmem>>, vector<1x8x128xf32>
    %61 = vector.shape_cast %60 : vector<1x8x128xf32> to vector<8x128xf32>
    %62 = vector.shape_cast %58 : vector<8x128xf32> to vector<1x8x128xf32>
    tpu.vector_store %arg8[%59, %c0_46, %c0_47], %62 {strides = array<i32>} : memref<16x8x128xf32, #tpu.memory_space<vmem>>, vector<1x8x128xf32>,
    %c5_i32 = arith.constant 5 : i32
    %c0_48 = arith.constant 0 : index
    %c0_49 = arith.constant 0 : index
    %63 = vector.load %arg3[%c0_48, %c0_49] : memref<128x128xf32, #tpu.memory_space<vmem>>, vector<128x128xf32>
    %cst_50 = arith.constant dense<0.000000e+00> : vector<8x128xf32>
    %64 = tpu.matmul %58, %63, %cst_50 {dimension_numbers = #tpu.dot_dimension_numbers<[1], [0], [0], [1], [0, 0, 1, 1], [], []>} : vector<8x128xf32>, vector<128x128xf32>, vector<8x128xf32> -> vector<8x128xf32>
    %65 = arith.index_cast %c5_i32 : i32 to index
    %c0_51 = arith.constant 0 : index
    %c0_52 = arith.constant 0 : index
    %66 = vector.load %arg11[%65, %c0_51, %c0_52] : memref<16x8x128xf32, #tpu.memory_space<vmem>>, vector<1x8x128xf32>
    %67 = vector.shape_cast %66 : vector<1x8x128xf32> to vector<8x128xf32>
    %68 = arith.addf %64, %67 : vector<8x128xf32>
    %69 = arith.index_cast %c5_i32 : i32 to index
    %c0_53 = arith.constant 0 : index
    %c0_54 = arith.constant 0 : index
    %70 = vector.load %arg8[%69, %c0_53, %c0_54] : memref<16x8x128xf32, #tpu.memory_space<vmem>>, vector<1x8x128xf32>
    %71 = vector.shape_cast %70 : vector<1x8x128xf32> to vector<8x128xf32>
    %72 = vector.shape_cast %68 : vector<8x128xf32> to vector<1x8x128xf32>
    tpu.vector_store %arg8[%69, %c0_53, %c0_54], %72 {strides = array<i32>} : memref<16x8x128xf32, #tpu.memory_space<vmem>>, vector<1x8x128xf32>,
    %c6_i32 = arith.constant 6 : i32
    %c0_55 = arith.constant 0 : index
    %c0_56 = arith.constant 0 : index
    %73 = vector.load %arg3[%c0_55, %c0_56] : memref<128x128xf32, #tpu.memory_space<vmem>>, vector<128x128xf32>
    %cst_57 = arith.constant dense<0.000000e+00> : vector<8x128xf32>
    %74 = tpu.matmul %68, %73, %cst_57 {dimension_numbers = #tpu.dot_dimension_numbers<[1], [0], [0], [1], [0, 0, 1, 1], [], []>} : vector<8x128xf32>, vector<128x128xf32>, vector<8x128xf32> -> vector<8x128xf32>
    %75 = arith.index_cast %c6_i32 : i32 to index
    %c0_58 = arith.constant 0 : index
    %c0_59 = arith.constant 0 : index
    %76 = vector.load %arg11[%75, %c0_58, %c0_59] : memref<16x8x128xf32, #tpu.memory_space<vmem>>, vector<1x8x128xf32>
    %77 = vector.shape_cast %76 : vector<1x8x128xf32> to vector<8x128xf32>
    %78 = arith.addf %74, %77 : vector<8x128xf32>
    %79 = arith.index_cast %c6_i32 : i32 to index
    %c0_60 = arith.constant 0 : index
    %c0_61 = arith.constant 0 : index
    %80 = vector.load %arg8[%79, %c0_60, %c0_61] : memref<16x8x128xf32, #tpu.memory_space<vmem>>, vector<1x8x128xf32>
    %81 = vector.shape_cast %80 : vector<1x8x128xf32> to vector<8x128xf32>
    %82 = vector.shape_cast %78 : vector<8x128xf32> to vector<1x8x128xf32>
    tpu.vector_store %arg8[%79, %c0_60, %c0_61], %82 {strides = array<i32>} : memref<16x8x128xf32, #tpu.memory_space<vmem>>, vector<1x8x128xf32>,
    %c7_i32 = arith.constant 7 : i32
    %c0_62 = arith.constant 0 : index
    %c0_63 = arith.constant 0 : index
    %83 = vector.load %arg3[%c0_62, %c0_63] : memref<128x128xf32, #tpu.memory_space<vmem>>, vector<128x128xf32>
    %cst_64 = arith.constant dense<0.000000e+00> : vector<8x128xf32>
    %84 = tpu.matmul %78, %83, %cst_64 {dimension_numbers = #tpu.dot_dimension_numbers<[1], [0], [0], [1], [0, 0, 1, 1], [], []>} : vector<8x128xf32>, vector<128x128xf32>, vector<8x128xf32> -> vector<8x128xf32>
    %85 = arith.index_cast %c7_i32 : i32 to index
    %c0_65 = arith.constant 0 : index
    %c0_66 = arith.constant 0 : index
    %86 = vector.load %arg11[%85, %c0_65, %c0_66] : memref<16x8x128xf32, #tpu.memory_space<vmem>>, vector<1x8x128xf32>
    %87 = vector.shape_cast %86 : vector<1x8x128xf32> to vector<8x128xf32>
    %88 = arith.addf %84, %87 : vector<8x128xf32>
    %89 = arith.index_cast %c7_i32 : i32 to index
    %c0_67 = arith.constant 0 : index
    %c0_68 = arith.constant 0 : index
    %90 = vector.load %arg8[%89, %c0_67, %c0_68] : memref<16x8x128xf32, #tpu.memory_space<vmem>>, vector<1x8x128xf32>
    %91 = vector.shape_cast %90 : vector<1x8x128xf32> to vector<8x128xf32>
    %92 = vector.shape_cast %88 : vector<8x128xf32> to vector<1x8x128xf32>
    tpu.vector_store %arg8[%89, %c0_67, %c0_68], %92 {strides = array<i32>} : memref<16x8x128xf32, #tpu.memory_space<vmem>>, vector<1x8x128xf32>,
    %c8_i32 = arith.constant 8 : i32
    %c0_69 = arith.constant 0 : index
    %c0_70 = arith.constant 0 : index
    %93 = vector.load %arg3[%c0_69, %c0_70] : memref<128x128xf32, #tpu.memory_space<vmem>>, vector<128x128xf32>
    %cst_71 = arith.constant dense<0.000000e+00> : vector<8x128xf32>
    %94 = tpu.matmul %88, %93, %cst_71 {dimension_numbers = #tpu.dot_dimension_numbers<[1], [0], [0], [1], [0, 0, 1, 1], [], []>} : vector<8x128xf32>, vector<128x128xf32>, vector<8x128xf32> -> vector<8x128xf32>
    %95 = arith.index_cast %c8_i32 : i32 to index
    %c0_72 = arith.constant 0 : index
    %c0_73 = arith.constant 0 : index
    %96 = vector.load %arg11[%95, %c0_72, %c0_73] : memref<16x8x128xf32, #tpu.memory_space<vmem>>, vector<1x8x128xf32>
    %97 = vector.shape_cast %96 : vector<1x8x128xf32> to vector<8x128xf32>
    %98 = arith.addf %94, %97 : vector<8x128xf32>
    %99 = arith.index_cast %c8_i32 : i32 to index
    %c0_74 = arith.constant 0 : index
    %c0_75 = arith.constant 0 : index
    %100 = vector.load %arg8[%99, %c0_74, %c0_75] : memref<16x8x128xf32, #tpu.memory_space<vmem>>, vector<1x8x128xf32>
    %101 = vector.shape_cast %100 : vector<1x8x128xf32> to vector<8x128xf32>
    %102 = vector.shape_cast %98 : vector<8x128xf32> to vector<1x8x128xf32>
    tpu.vector_store %arg8[%99, %c0_74, %c0_75], %102 {strides = array<i32>} : memref<16x8x128xf32, #tpu.memory_space<vmem>>, vector<1x8x128xf32>,
    %c9_i32 = arith.constant 9 : i32
    %c0_76 = arith.constant 0 : index
    %c0_77 = arith.constant 0 : index
    %103 = vector.load %arg3[%c0_76, %c0_77] : memref<128x128xf32, #tpu.memory_space<vmem>>, vector<128x128xf32>
    %cst_78 = arith.constant dense<0.000000e+00> : vector<8x128xf32>
    %104 = tpu.matmul %98, %103, %cst_78 {dimension_numbers = #tpu.dot_dimension_numbers<[1], [0], [0], [1], [0, 0, 1, 1], [], []>} : vector<8x128xf32>, vector<128x128xf32>, vector<8x128xf32> -> vector<8x128xf32>
    %105 = arith.index_cast %c9_i32 : i32 to index
    %c0_79 = arith.constant 0 : index
    %c0_80 = arith.constant 0 : index
    %106 = vector.load %arg11[%105, %c0_79, %c0_80] : memref<16x8x128xf32, #tpu.memory_space<vmem>>, vector<1x8x128xf32>
    %107 = vector.shape_cast %106 : vector<1x8x128xf32> to vector<8x128xf32>
    %108 = arith.addf %104, %107 : vector<8x128xf32>
    %109 = arith.index_cast %c9_i32 : i32 to index
    %c0_81 = arith.constant 0 : index
    %c0_82 = arith.constant 0 : index
    %110 = vector.load %arg8[%109, %c0_81, %c0_82] : memref<16x8x128xf32, #tpu.memory_space<vmem>>, vector<1x8x128xf32>
    %111 = vector.shape_cast %110 : vector<1x8x128xf32> to vector<8x128xf32>
    %112 = vector.shape_cast %108 : vector<8x128xf32> to vector<1x8x128xf32>
    tpu.vector_store %arg8[%109, %c0_81, %c0_82], %112 {strides = array<i32>} : memref<16x8x128xf32, #tpu.memory_space<vmem>>, vector<1x8x128xf32>,
    %c10_i32 = arith.constant 10 : i32
    %c0_83 = arith.constant 0 : index
    %c0_84 = arith.constant 0 : index
    %113 = vector.load %arg3[%c0_83, %c0_84] : memref<128x128xf32, #tpu.memory_space<vmem>>, vector<128x128xf32>
    %cst_85 = arith.constant dense<0.000000e+00> : vector<8x128xf32>
    %114 = tpu.matmul %108, %113, %cst_85 {dimension_numbers = #tpu.dot_dimension_numbers<[1], [0], [0], [1], [0, 0, 1, 1], [], []>} : vector<8x128xf32>, vector<128x128xf32>, vector<8x128xf32> -> vector<8x128xf32>
    %115 = arith.index_cast %c10_i32 : i32 to index
    %c0_86 = arith.constant 0 : index
    %c0_87 = arith.constant 0 : index
    %116 = vector.load %arg11[%115, %c0_86, %c0_87] : memref<16x8x128xf32, #tpu.memory_space<vmem>>, vector<1x8x128xf32>
    %117 = vector.shape_cast %116 : vector<1x8x128xf32> to vector<8x128xf32>
    %118 = arith.addf %114, %117 : vector<8x128xf32>
    %119 = arith.index_cast %c10_i32 : i32 to index
    %c0_88 = arith.constant 0 : index
    %c0_89 = arith.constant 0 : index
    %120 = vector.load %arg8[%119, %c0_88, %c0_89] : memref<16x8x128xf32, #tpu.memory_space<vmem>>, vector<1x8x128xf32>
    %121 = vector.shape_cast %120 : vector<1x8x128xf32> to vector<8x128xf32>
    %122 = vector.shape_cast %118 : vector<8x128xf32> to vector<1x8x128xf32>
    tpu.vector_store %arg8[%119, %c0_88, %c0_89], %122 {strides = array<i32>} : memref<16x8x128xf32, #tpu.memory_space<vmem>>, vector<1x8x128xf32>,
    %c11_i32 = arith.constant 11 : i32
    %c0_90 = arith.constant 0 : index
    %c0_91 = arith.constant 0 : index
    %123 = vector.load %arg3[%c0_90, %c0_91] : memref<128x128xf32, #tpu.memory_space<vmem>>, vector<128x128xf32>
    %cst_92 = arith.constant dense<0.000000e+00> : vector<8x128xf32>
    %124 = tpu.matmul %118, %123, %cst_92 {dimension_numbers = #tpu.dot_dimension_numbers<[1], [0], [0], [1], [0, 0, 1, 1], [], []>} : vector<8x128xf32>, vector<128x128xf32>, vector<8x128xf32> -> vector<8x128xf32>
    %125 = arith.index_cast %c11_i32 : i32 to index
    %c0_93 = arith.constant 0 : index
    %c0_94 = arith.constant 0 : index
    %126 = vector.load %arg11[%125, %c0_93, %c0_94] : memref<16x8x128xf32, #tpu.memory_space<vmem>>, vector<1x8x128xf32>
    %127 = vector.shape_cast %126 : vector<1x8x128xf32> to vector<8x128xf32>
    %128 = arith.addf %124, %127 : vector<8x128xf32>
    %129 = arith.index_cast %c11_i32 : i32 to index
    %c0_95 = arith.constant 0 : index
    %c0_96 = arith.constant 0 : index
    %130 = vector.load %arg8[%129, %c0_95, %c0_96] : memref<16x8x128xf32, #tpu.memory_space<vmem>>, vector<1x8x128xf32>
    %131 = vector.shape_cast %130 : vector<1x8x128xf32> to vector<8x128xf32>
    %132 = vector.shape_cast %128 : vector<8x128xf32> to vector<1x8x128xf32>
    tpu.vector_store %arg8[%129, %c0_95, %c0_96], %132 {strides = array<i32>} : memref<16x8x128xf32, #tpu.memory_space<vmem>>, vector<1x8x128xf32>,
    %c12_i32 = arith.constant 12 : i32
    %c0_97 = arith.constant 0 : index
    %c0_98 = arith.constant 0 : index
    %133 = vector.load %arg3[%c0_97, %c0_98] : memref<128x128xf32, #tpu.memory_space<vmem>>, vector<128x128xf32>
    %cst_99 = arith.constant dense<0.000000e+00> : vector<8x128xf32>
    %134 = tpu.matmul %128, %133, %cst_99 {dimension_numbers = #tpu.dot_dimension_numbers<[1], [0], [0], [1], [0, 0, 1, 1], [], []>} : vector<8x128xf32>, vector<128x128xf32>, vector<8x128xf32> -> vector<8x128xf32>
    %135 = arith.index_cast %c12_i32 : i32 to index
    %c0_100 = arith.constant 0 : index
    %c0_101 = arith.constant 0 : index
    %136 = vector.load %arg11[%135, %c0_100, %c0_101] : memref<16x8x128xf32, #tpu.memory_space<vmem>>, vector<1x8x128xf32>
    %137 = vector.shape_cast %136 : vector<1x8x128xf32> to vector<8x128xf32>
    %138 = arith.addf %134, %137 : vector<8x128xf32>
    %139 = arith.index_cast %c12_i32 : i32 to index
    %c0_102 = arith.constant 0 : index
    %c0_103 = arith.constant 0 : index
    %140 = vector.load %arg8[%139, %c0_102, %c0_103] : memref<16x8x128xf32, #tpu.memory_space<vmem>>, vector<1x8x128xf32>
    %141 = vector.shape_cast %140 : vector<1x8x128xf32> to vector<8x128xf32>
    %142 = vector.shape_cast %138 : vector<8x128xf32> to vector<1x8x128xf32>
    tpu.vector_store %arg8[%139, %c0_102, %c0_103], %142 {strides = array<i32>} : memref<16x8x128xf32, #tpu.memory_space<vmem>>, vector<1x8x128xf32>,
    %c13_i32 = arith.constant 13 : i32
    %c0_104 = arith.constant 0 : index
    %c0_105 = arith.constant 0 : index
    %143 = vector.load %arg3[%c0_104, %c0_105] : memref<128x128xf32, #tpu.memory_space<vmem>>, vector<128x128xf32>
    %cst_106 = arith.constant dense<0.000000e+00> : vector<8x128xf32>
    %144 = tpu.matmul %138, %143, %cst_106 {dimension_numbers = #tpu.dot_dimension_numbers<[1], [0], [0], [1], [0, 0, 1, 1], [], []>} : vector<8x128xf32>, vector<128x128xf32>, vector<8x128xf32> -> vector<8x128xf32>
    %145 = arith.index_cast %c13_i32 : i32 to index
    %c0_107 = arith.constant 0 : index
    %c0_108 = arith.constant 0 : index
    %146 = vector.load %arg11[%145, %c0_107, %c0_108] : memref<16x8x128xf32, #tpu.memory_space<vmem>>, vector<1x8x128xf32>
    %147 = vector.shape_cast %146 : vector<1x8x128xf32> to vector<8x128xf32>
    %148 = arith.addf %144, %147 : vector<8x128xf32>
    %149 = arith.index_cast %c13_i32 : i32 to index
    %c0_109 = arith.constant 0 : index
    %c0_110 = arith.constant 0 : index
    %150 = vector.load %arg8[%149, %c0_109, %c0_110] : memref<16x8x128xf32, #tpu.memory_space<vmem>>, vector<1x8x128xf32>
    %151 = vector.shape_cast %150 : vector<1x8x128xf32> to vector<8x128xf32>
    %152 = vector.shape_cast %148 : vector<8x128xf32> to vector<1x8x128xf32>
    tpu.vector_store %arg8[%149, %c0_109, %c0_110], %152 {strides = array<i32>} : memref<16x8x128xf32, #tpu.memory_space<vmem>>, vector<1x8x128xf32>,
    %c14_i32 = arith.constant 14 : i32
    %c0_111 = arith.constant 0 : index
    %c0_112 = arith.constant 0 : index
    %153 = vector.load %arg3[%c0_111, %c0_112] : memref<128x128xf32, #tpu.memory_space<vmem>>, vector<128x128xf32>
    %cst_113 = arith.constant dense<0.000000e+00> : vector<8x128xf32>
    %154 = tpu.matmul %148, %153, %cst_113 {dimension_numbers = #tpu.dot_dimension_numbers<[1], [0], [0], [1], [0, 0, 1, 1], [], []>} : vector<8x128xf32>, vector<128x128xf32>, vector<8x128xf32> -> vector<8x128xf32>
    %155 = arith.index_cast %c14_i32 : i32 to index
    %c0_114 = arith.constant 0 : index
    %c0_115 = arith.constant 0 : index
    %156 = vector.load %arg11[%155, %c0_114, %c0_115] : memref<16x8x128xf32, #tpu.memory_space<vmem>>, vector<1x8x128xf32>
    %157 = vector.shape_cast %156 : vector<1x8x128xf32> to vector<8x128xf32>
    %158 = arith.addf %154, %157 : vector<8x128xf32>
    %159 = arith.index_cast %c14_i32 : i32 to index
    %c0_116 = arith.constant 0 : index
    %c0_117 = arith.constant 0 : index
    %160 = vector.load %arg8[%159, %c0_116, %c0_117] : memref<16x8x128xf32, #tpu.memory_space<vmem>>, vector<1x8x128xf32>
    %161 = vector.shape_cast %160 : vector<1x8x128xf32> to vector<8x128xf32>
    %162 = vector.shape_cast %158 : vector<8x128xf32> to vector<1x8x128xf32>
    tpu.vector_store %arg8[%159, %c0_116, %c0_117], %162 {strides = array<i32>} : memref<16x8x128xf32, #tpu.memory_space<vmem>>, vector<1x8x128xf32>,
    %c15_i32 = arith.constant 15 : i32
    %c0_118 = arith.constant 0 : index
    %c0_119 = arith.constant 0 : index
    %163 = vector.load %arg3[%c0_118, %c0_119] : memref<128x128xf32, #tpu.memory_space<vmem>>, vector<128x128xf32>
    %cst_120 = arith.constant dense<0.000000e+00> : vector<8x128xf32>
    %164 = tpu.matmul %158, %163, %cst_120 {dimension_numbers = #tpu.dot_dimension_numbers<[1], [0], [0], [1], [0, 0, 1, 1], [], []>} : vector<8x128xf32>, vector<128x128xf32>, vector<8x128xf32> -> vector<8x128xf32>
    %165 = arith.index_cast %c15_i32 : i32 to index
    %c0_121 = arith.constant 0 : index
    %c0_122 = arith.constant 0 : index
    %166 = vector.load %arg11[%165, %c0_121, %c0_122] : memref<16x8x128xf32, #tpu.memory_space<vmem>>, vector<1x8x128xf32>
    %167 = vector.shape_cast %166 : vector<1x8x128xf32> to vector<8x128xf32>
    %168 = arith.addf %164, %167 : vector<8x128xf32>
    %169 = arith.index_cast %c15_i32 : i32 to index
    %c0_123 = arith.constant 0 : index
    %c0_124 = arith.constant 0 : index
    %170 = vector.load %arg8[%169, %c0_123, %c0_124] : memref<16x8x128xf32, #tpu.memory_space<vmem>>, vector<1x8x128xf32>
    %171 = vector.shape_cast %170 : vector<1x8x128xf32> to vector<8x128xf32>
    %172 = vector.shape_cast %168 : vector<8x128xf32> to vector<1x8x128xf32>
    tpu.vector_store %arg8[%169, %c0_123, %c0_124], %172 {strides = array<i32>} : memref<16x8x128xf32, #tpu.memory_space<vmem>>, vector<1x8x128xf32>,
    %c16_i32 = arith.constant 16 : i32
    %c0_125 = arith.constant 0 : index
    %c0_126 = arith.constant 0 : index
    %173 = vector.load %arg10[%c0_125, %c0_126] : memref<8x128xf32, #tpu.memory_space<vmem>>, vector<8x128xf32>
    tpu.vector_store %arg10[%c0_125, %c0_126], %168 {strides = array<i32>} : memref<8x128xf32, #tpu.memory_space<vmem>>, vector<8x128xf32>,
    %c0_127 = arith.constant 0 : index
    %c0_128 = arith.constant 0 : index
    %c0_129 = arith.constant 0 : index
    %174 = vector.load %arg8[%c0_127, %c0_128, %c0_129] : memref<16x8x128xf32, #tpu.memory_space<vmem>>, vector<16x8x128xf32>
    %175 = vector.shape_cast %174 : vector<16x8x128xf32> to vector<128x128xf32>
    %c0_130 = arith.constant 0 : index
    %c0_131 = arith.constant 0 : index
    %176 = vector.load %arg6[%c0_130, %c0_131] : memref<128x128xf32, #tpu.memory_space<vmem>>, vector<128x128xf32>
    %cst_132 = arith.constant dense<0.000000e+00> : vector<128x128xf32>
    %177 = tpu.matmul %175, %176, %cst_132 {dimension_numbers = #tpu.dot_dimension_numbers<[1], [0], [0], [1], [0, 0, 1, 1], [], []>} : vector<128x128xf32>, vector<128x128xf32>, vector<128x128xf32> -> vector<128x128xf32>
    %c0_133 = arith.constant 0 : index
    %c0_134 = arith.constant 0 : index
    %178 = vector.load %arg7[%c0_133, %c0_134] : memref<1x128xf32, #tpu.memory_space<vmem>>, vector<1x128xf32>
    %179 = vector.broadcast %178 : vector<1x128xf32> to vector<128x128xf32>
    %180 = arith.addf %177, %179 : vector<128x128xf32>
    %181 = vector.shape_cast %180 : vector<128x128xf32> to vector<16x8x128xf32>
    %c0_135 = arith.constant 0 : index
    %c0_136 = arith.constant 0 : index
    %c0_137 = arith.constant 0 : index
    %182 = vector.load %arg9[%c0_135, %c0_136, %c0_137] : memref<16x8x128xf32, #tpu.memory_space<vmem>>, vector<16x8x128xf32>
    tpu.vector_store %arg9[%c0_135, %c0_136, %c0_137], %181 {strides = array<i32>} : memref<16x8x128xf32, #tpu.memory_space<vmem>>, vector<16x8x128xf32>,
    return
  }
  func.func @transform_0(%arg0: i32) -> (i32, i32) {
    %c0_i32 = arith.constant 0 : i32
    %c0_i32_0 = arith.constant 0 : i32
    %c0_i32_1 = arith.constant 0 : i32
    return %c0_i32, %c0_i32_0 : i32, i32
  }
  func.func @transform_1(%arg0: i32) -> (i32, i32, i32) {
    %c0_i32 = arith.constant 0 : i32
    %c0_i32_0 = arith.constant 0 : i32
    %c0_i32_1 = arith.constant 0 : i32
    return %arg0, %c0_i32, %c0_i32_0 : i32, i32, i32
  }
  func.func @transform_2(%arg0: i32) -> (i32, i32) {
    %c0_i32 = arith.constant 0 : i32
    %c0_i32_0 = arith.constant 0 : i32
    %c0_i32_1 = arith.constant 0 : i32
    return %c0_i32, %c0_i32_0 : i32, i32
  }
  func.func @transform_3(%arg0: i32) -> (i32, i32) {
    %c0_i32 = arith.constant 0 : i32
    %c0_i32_0 = arith.constant 0 : i32
    %c0_i32_1 = arith.constant 0 : i32
    return %c0_i32, %c0_i32_0 : i32, i32
  }
  func.func @transform_4(%arg0: i32) -> (i32, i32) {
    %c0_i32 = arith.constant 0 : i32
    %c0_i32_0 = arith.constant 0 : i32
    %c0_i32_1 = arith.constant 0 : i32
    return %c0_i32, %c0_i32_0 : i32, i32
  }
  func.func @transform_5(%arg0: i32) -> (i32, i32) {
    %c0_i32 = arith.constant 0 : i32
    %c0_i32_0 = arith.constant 0 : i32
    %c0_i32_1 = arith.constant 0 : i32
    return %c0_i32, %c0_i32_0 : i32, i32
  }
  func.func @transform_6(%arg0: i32) -> (i32, i32) {
    %c0_i32 = arith.constant 0 : i32
    %c0_i32_0 = arith.constant 0 : i32
    %c0_i32_1 = arith.constant 0 : i32
    return %c0_i32, %c0_i32_0 : i32, i32
  }
  func.func @transform_7(%arg0: i32) -> (i32, i32, i32) {
    %c0_i32 = arith.constant 0 : i32
    %c0_i32_0 = arith.constant 0 : i32
    %c0_i32_1 = arith.constant 0 : i32
    return %arg0, %c0_i32, %c0_i32_0 : i32, i32, i32
  }
  func.func @transform_8(%arg0: i32) -> (i32, i32, i32) {
    %c0_i32 = arith.constant 0 : i32
    %c0_i32_0 = arith.constant 0 : i32
    %c0_i32_1 = arith.constant 0 : i32
    return %arg0, %c0_i32, %c0_i32_0 : i32, i32, i32
  }
}

</mosaic_0001>

<bundles_post_ra>
// kernel: cell_forward_seq.1
= control target key start
LH: loop header
LB: loop body
LE: loop exit
PB: predicated region body
PF: predicated region fallthrough
CT: control target
= control target key end

     0   :  { %14 = vsyncpa [#allocation5], 0  ;;  %s4717_s0 = inlined_call_operand.vmem [shape: f32[8,128], index: 0, kind: input, shape index: {}]   ;;  %s4718_s1 = inlined_call_operand.vmem [shape: f32[32,8,128], index: 1, kind: input, shape index: {}]   ;;  %s4719_s2 = inlined_call_operand.vmem [shape: f32[128,128], index: 2, kind: input, shape index: {}]   ;;  %s4720_s3 = inlined_call_operand.vmem [shape: f32[128,128], index: 3, kind: input, shape index: {}]   ;;  %s4721_s4 = inlined_call_operand.vmem [shape: f32[1,128], index: 4, kind: input, shape index: {}]   ;;  %s4722_s5 = inlined_call_operand.vmem [shape: f32[128,128], index: 5, kind: input, shape index: {}]   ;;  %s4723_s6 = inlined_call_operand.vmem [shape: f32[1,128], index: 6, kind: input, shape index: {}]   ;;  %s4724_s7 = inlined_call_operand.vmem [shape: f32[32,8,128], index: 7, kind: output, shape index: {0}]   ;;  %s4725_s8 = inlined_call_operand.hbm [shape: f32[32,8,128], index: 8, kind: output, shape index: {1}]  }
   0x1   :  { %16 = vsyncpa [#allocation5 + $0x1], 0  ;;  %s3925_s27 = smov 0   ;;  %s3927_s28 = smov 0  }
   0x2   :  { %s3929_s29 = smov 0   ;;  %s3931_s30 = smov 0  }
   0x3 LB: > { %s3946_s9 = sadd.s32 4294967295, %s3872_s30   ;;  %s2277_s10 = sadd.s32 4294967294, %s3872_s30   ;;  %s3872_s30 = sphi %s3931_s30, %s4733_s30   ;;  %s3868_s29 = sphi %s3929_s29, %s4732_s29   ;;  %s3864_s28 = sphi %s3927_s28, %s4731_s28   ;;  %s3860_s27 = sphi %s3925_s27, %s4730_s27  }
   0x4   : > { %s3950_s11 = sadd.s32 1, %s3872_s30   ;;  %s207_s12 = sadd.s32 1, %s3868_s29 }
   0x5   : > { %s204_s13 = ssub.s32 %s3872_s30, %s3950_s11  ;;  %p217_p0 = scmp.ne.s32.totalorder %s3868_s29, %s3864_s28 }
   0x6   : > { %p205_p1 = scmp.eq.s32.totalorder %s204_s13, 0  ;;  %p218_p2 = scmp.eq.s32.totalorder %s3946_s9, 1 }
   0x7   : > { %p223_p3 = scmp.ne.s32.totalorder %s3864_s28, %s3860_s27  ;;  %p224_p4 = scmp.eq.s32.totalorder %s2277_s10, 1 }
   0x8   : > { %s3961_s14 = scalar_select %p205_p1, %s3868_s29, %s207_s12  }
   0x9   : > { %p3963_p5 = por %p218_p2, %p217_p0  ;;  %p3967_p6 = por %p224_p4, %p223_p3 }
   0xa   : > { %p2280_p7 = scmp.ge.s32.totalorder %s3872_s30, 1  ;;  %p269_p8 = scmp.lt.s32.totalorder %s3872_s30, 3 }
   0xc   : > { %p270_p9 = pnand %p2280_p7, %p269_p8 }
   0xd   : > { %s4726_s17 = sand.u32 (!%p270_p9), 1, %s3864_s28   ;;  %s2282_s18 = sshll.u32 (!%p270_p9), %s3946_s9, 4 }
   0xe   : > { %273 = sbr.rel (%p270_p9) target bundleno = 3720 (0xe88), region = 48  ;;  %s2281_s19 = sshll.u32 (!%p270_p9), %s4726_s17, 7 }
   0xf   : > { %p309_p10 = scmp.lt.s32.totalorder (!%p270_p9), %s2282_s18, 31  ;;  %s3987_s10 = scalar_lea.vmem (!%p270_p9), [#allocation4], %s2281_s19 }
  0x10   : > { %p2286_p11 = scmp.ne.s32.totalorder (!%p270_p9), %s3946_s9, 0 }
  0x15   : > { %s4735_s18 = smov (!%p309_p10, %s2282_s18), 31  ;;  %324 = sbr.rel (%p2286_p11) target bundleno = 28 (0x1c), region = 52 }
  0x16   : > { %s2283_s20 = sshll.u32 %s4735_s18, 3  ;;  %v325_v0 = vld [vmem:[%s4717_s0] sm:$0xff] (!%p2286_p11) }
  0x17   : > { %s3980_s23 = scalar_lea.vmem %s4718_s1, %s2283_s20  ;;  %s3985_s26 = scalar_lea.vmem %s4724_s7, %s2283_s20  ;;  %326 = vst [vmem:[#allocation2] sm:$0xff] (!%p2286_p11), %v325_v0 }
  0x1c PF: > { %v343_v1 = vld [vmem:[%s4720_s3] sm:$0xff]  ;;  %v344_v2 = vld [vmem:[%s4720_s3 + $0x8] sm:$0xff]  ;;  %v3874_v5 = vmov 0.0|0.0   ;;  %v345_v7 = vld [vmem:[%s4720_s3 + $0x10] sm:$0xff]  ;;  %vm3875_vm0 = vmmov 0   ;;  %v3876_v9 = vmov 0.0  }
  0x1d   : > { %v528_v3 = vld [vmem:[%s4719_s2] sm:$0xff]  ;;  %v3318_v4 = vpack.c.bf16 %v344_v2, %v343_v1  ;;  %3350 = vmatprep.subr.bf16.mxu1 %v3874_v5  ;;  %v529_v6 = vld [vmem:[%s4719_s2 + $0x8] sm:$0xff]  ;;  %v346_v8 = vld [vmem:[%s4720_s3 + $0x18] sm:$0xff]  ;;  %2734 = vmatprep.mubr.msk.f32.mxu1 %vm3875_vm0, %v3876_v9  ;;  %s2190_s24 = sshll.u32 %s3987_s10, 4  ;;  %s3877_s21 = smov [#allocation4]   ;;  %s4670_s24 = int_to_ptr.vmem [resolvable:$true] %s2190_s24 }
  0x1e   : > { %v4014_v10 = vpack.c.bf16 %v529_v6, %v528_v3  ;;  %v3322_v11 = vpack.c.bf16 %v346_v8, %v345_v7  ;;  %v530_v12 = vld [vmem:[%s4719_s2 + $0x10] sm:$0xff]  ;;  %v531_v13 = vld [vmem:[%s4719_s2 + $0x18] sm:$0xff]  ;;  %v347_v14 = vld [vmem:[%s4720_s3 + $0x20] sm:$0xff]  ;;  %s3814_s17 = sshll.u32 %s3877_s21, 4  ;;  %s3815_s17 = int_to_ptr.vmem [resolvable:$false] %s3814_s17 }
  0x1f   : > { %3319 = vmatprep.subr.bf16.mxu0 %v3318_v4  ;;  %v348_v15 = vld [vmem:[%s4720_s3 + $0x28] sm:$0xff]  ;;  %v4029_v16 = vpack.c.bf16 %v531_v13, %v530_v12  ;;  %v532_v18 = vld [vmem:[%s4719_s2 + $0x20] sm:$0xff]  ;;  %v349_v20 = vld [vmem:[%s4720_s3 + $0x30] sm:$0xff]  ;;  %s3816_s22 = scalar_lea.vmem %s3815_s17, 4096  ;;  %p3817_p1 = scmp.lt.s32.totalorder %s4670_s24, %s3815_s17 }
  0x20   : > { %3321 = vmatpush3.bf16.msra.mxu0 %v3318_v4  ;;  %3352 = vmatpush3.bf16.msra.mxu1 %v4014_v10  ;;  %v3326_v17 = vpack.c.bf16 %v348_v15, %v347_v14  ;;  %v533_v19 = vld [vmem:[%s4719_s2 + $0x28] sm:$0xff]  ;;  %v350_v21 = vld [vmem:[%s4720_s3 + $0x38] sm:$0xff]  ;;  %v534_v24 = vld [vmem:[%s4719_s2 + $0x30] sm:$0xff] }
  0x21   : > { %3323 = vmatprep.subr.bf16.mxu0 %v3322_v11  ;;  %3353 = vmatprep.subr.bf16.mxu1 %v3874_v5  ;;  %v4045_v22 = vpack.c.bf16 %v533_v19, %v532_v18  ;;  %v3330_v23 = vpack.c.bf16 %v350_v21, %v349_v20  ;;  %v535_v25 = vld [vmem:[%s4719_s2 + $0x38] sm:$0xff]  ;;  %v351_v26 = vld [vmem:[%s4720_s3 + $0x40] sm:$0xff]  ;;  %v352_v27 = vld [vmem:[%s4720_s3 + $0x48] sm:$0xff] }
  0x22   : > { %v327_v28 = vld [vmem:[%s3980_s23] sm:$0xff]  ;;  %v4062_v29 = vpack.c.bf16 %v535_v25, %v534_v24  ;;  %v3334_v30 = vpack.c.bf16 %v352_v27, %v351_v26  ;;  %v537_v32 = vld [vmem:[%s4719_s2 + $0x48] sm:$0xff]  ;;  %v353_v33 = vld [vmem:[%s4720_s3 + $0x50] sm:$0xff] }
  0x23   : > { %2678 = vmatprep.mubr.f32.mxu0 %v327_v28  ;;  %v536_v31 = vld [vmem:[%s4719_s2 + $0x40] sm:$0xff]  ;;  %v354_v34 = vld [vmem:[%s4720_s3 + $0x58] sm:$0xff]  ;;  %v538_v37 = vld [vmem:[%s4719_s2 + $0x50] sm:$0xff] }
  0x24   : > { %3325 = vmatpush3.bf16.msra.mxu0 %v3322_v11  ;;  %3355 = vmatpush3.bf16.msra.mxu1 %v4029_v16  ;;  %v4078_v35 = vpack.c.bf16 %v537_v32, %v536_v31  ;;  %v3338_v36 = vpack.c.bf16 %v354_v34, %v353_v33  ;;  %v539_v38 = vld [vmem:[%s4719_s2 + $0x58] sm:$0xff]  ;;  %v355_v39 = vld [vmem:[%s4720_s3 + $0x60] sm:$0xff]  ;;  %v356_v40 = vld [vmem:[%s4720_s3 + $0x68] sm:$0xff] }
  0x25   : > { %3327 = vmatprep.subr.bf16.mxu0 %v3326_v17  ;;  %3356 = vmatprep.subr.bf16.mxu1 %v3874_v5  ;;  %v4094_v41 = vpack.c.bf16 %v539_v38, %v538_v37  ;;  %v3342_v42 = vpack.c.bf16 %v356_v40, %v355_v39  ;;  %v540_v43 = vld [vmem:[%s4719_s2 + $0x60] sm:$0xff]  ;;  %v541_v44 = vld [vmem:[%s4719_s2 + $0x68] sm:$0xff]  ;;  %v357_v45 = vld [vmem:[%s4720_s3 + $0x70] sm:$0xff] }
  0x26   : > { %v358_v46 = vld [vmem:[%s4720_s3 + $0x78] sm:$0xff]  ;;  %v4110_v47 = vpack.c.bf16 %v541_v44, %v540_v43  ;;  %v542_v49 = vld [vmem:[%s4719_s2 + $0x70] sm:$0xff]  ;;  %v328_v52 = vld [vmem:[%s3980_s23 + $0x8] sm:$0xff] }
  0x27   : > { %v3346_v48 = vpack.c.bf16 %v358_v46, %v357_v45  ;;  %v543_v50 = vld [vmem:[%s4719_s2 + $0x78] sm:$0xff]  ;;  %v527_v53 = vld [vmem:[#allocation2] sm:$0xff]  ;;  %v329_v54 = vld [vmem:[%s3980_s23 + $0x10] sm:$0xff] }
  0x28   : > { %3329 = vmatpush3.bf16.msra.mxu0 %v3326_v17  ;;  %3358 = vmatpush3.bf16.msra.mxu1 %v4045_v22  ;;  %v4120_v51 = vpack.c.bf16 %v543_v50, %v542_v49  ;;  %v330_v55 = vld [vmem:[%s3980_s23 + $0x18] sm:$0xff]  ;;  %v331_v56 = vld [vmem:[%s3980_s23 + $0x20] sm:$0xff]  ;;  %v332_v57 = vld [vmem:[%s3980_s23 + $0x28] sm:$0xff] }
  0x29   : > { %3331 = vmatprep.subr.bf16.mxu0 %v3330_v23  ;;  %3359 = vmatprep.subr.bf16.mxu1 %v3874_v5  ;;  %v333_v58 = vld [vmem:[%s3980_s23 + $0x30] sm:$0xff]  ;;  %v334_v59 = vld [vmem:[%s3980_s23 + $0x38] sm:$0xff]  ;;  %v335_v60 = vld [vmem:[%s3980_s23 + $0x40] sm:$0xff] }
  0x2a   : > { %v336_v61 = vld [vmem:[%s3980_s23 + $0x48] sm:$0xff]  ;;  %v337_v62 = vld [vmem:[%s3980_s23 + $0x50] sm:$0xff]  ;;  %v338_v63 = vld [vmem:[%s3980_s23 + $0x58] sm:$0xff] }
  0x2b   : > { %v339_v0 = vld [vmem:[%s3980_s23 + $0x60] sm:$0xff]  ;;  %v340_v1 = vld [vmem:[%s3980_s23 + $0x68] sm:$0xff]  ;;  %v341_v2 = vld [vmem:[%s3980_s23 + $0x70] sm:$0xff] }
  0x2c   : > { %3333 = vmatpush3.bf16.msra.mxu0 %v3330_v23  ;;  %3361 = vmatpush3.bf16.msra.mxu1 %v4062_v29  ;;  %v342_v3 = vld [vmem:[%s3980_s23 + $0x78] sm:$0xff]  ;;  %v4180_v4 = vld [vmem:[%s4721_s4] ss:$0 sm:$0xff]  ;;  %s2309_s23 = sshll.u32 %s3946_s9, 11  ;;  %s3810_s9 = scalar_lea.vmem %s4670_s24, 2048 }
  0x2d   : > { %3335 = vmatprep.subr.bf16.mxu0 %v3334_v30  ;;  %3362 = vmatprep.subr.bf16.mxu1 %v3874_v5  ;;  %s4668_s13 = scalar_lea.hbm %s4725_s8, %s2309_s23  ;;  %p3811_p12 = scmp.ne.s32.totalorder %s4670_s24, %s3810_s9 }
  0x2e   : > { %p3818_p2 = scmp.lt.s32.totalorder %s3816_s22, %s3810_s9 }
  0x2f   : > { %p3812_p13 = pnand %p3811_p12, %p3963_p5 }
  0x30   : > { %3337 = vmatpush3.bf16.msra.mxu0 %v3334_v30  ;;  %3364 = vmatpush3.bf16.msra.mxu1 %v4078_v35  ;;  %p3819_p3 = por %p3818_p2, %p3817_p1 }
  0x31   : > { %3339 = vmatprep.subr.bf16.mxu0 %v3338_v36  ;;  %3365 = vmatprep.subr.bf16.mxu1 %v3874_v5  ;;  %p3813_p0 = pneg %p3812_p13 }
  0x33   : > { %p3820_p4 = pnand %p3819_p3, %p3813_p0 }
  0x34   : > { %3341 = vmatpush3.bf16.msra.mxu0 %v3338_v36  ;;  %3367 = vmatpush3.bf16.msra.mxu1 %v4094_v41 }
  0x35   : > { %3343 = vmatprep.subr.bf16.mxu0 %v3342_v42  ;;  %3368 = vmatprep.subr.bf16.mxu1 %v3874_v5 }
  0x38   : > { %3345 = vmatpush3.bf16.msra.mxu0 %v3342_v42  ;;  %3370 = vmatpush3.bf16.msra.mxu1 %v4110_v47 }
  0x39   : > { %3347 = vmatprep.subr.bf16.mxu0 %v3346_v48  ;;  %3371 = vmatprep.subr.bf16.mxu1 %v3874_v5 }
  0x3c   : > { %3349 = vmatpush3.bf16.msra.mxu0 %v3346_v48  ;;  %3373 = vmatpush3.bf16.msra.mxu1 %v4120_v51 }
  0x3d   : > { %3374 = vmatprep.subr.bf16.mxu0 %v3874_v5  ;;  %3398 = vmatprep.subr.bf16.mxu1 %v3874_v5 }
  0x3f   : > { %2679 = vmatmul.mubr.f32.vlgmr.msra.gmra.mrb[0].mxu0 %v328_v52  ;;  %2735 = vmatmul.mubr.f32.vlgmr.msra.gmra.mrb[0].mxu1 %v527_v53 }
  0x40   : > { %3376 = vmatpush3.bf16.msra.mxu0 %v4014_v10  ;;  %2681 = vmatprep.mubr.f32.mxu0 %v329_v54 }
  0x41   : > { %3377 = vmatprep.subr.bf16.mxu0 %v3874_v5  ;;  %3400 = vmatpush3.bf16.msra.mxu1 %v4014_v10 }
  0x42   : > { %3401 = vmatprep.subr.bf16.mxu1 %v3874_v5  ;;  %2804 = vmatprep.mubr.msk.f32.mxu1 %vm3875_vm0, %v3876_v9 }
  0x43   : > { %2682 = vmatmul.mubr.f32.gmra.mrb[2].mxu0 %v330_v55 }
  0x44   : > { %3379 = vmatpush3.bf16.msra.mxu0 %v4029_v16  ;;  %2684 = vmatprep.mubr.f32.mxu0 %v331_v56 }
  0x45   : > { %3380 = vmatprep.subr.bf16.mxu0 %v3874_v5  ;;  %3403 = vmatpush3.bf16.msra.mxu1 %v4029_v16 }
  0x46   : > { %3404 = vmatprep.subr.bf16.mxu1 %v3874_v5 }
  0x47   : > { %2685 = vmatmul.mubr.f32.gmra.mrb[4].mxu0 %v332_v57 }
  0x48   : > { %3382 = vmatpush3.bf16.msra.mxu0 %v4045_v22  ;;  %2687 = vmatprep.mubr.f32.mxu0 %v333_v58  ;;  %v1336_v58 = vld [vmem:[%s4719_s2] sm:$0xff] }
  0x49   : > { %3383 = vmatprep.subr.bf16.mxu0 %v3874_v5  ;;  %3406 = vmatpush3.bf16.msra.mxu1 %v4045_v22 }
  0x4a   : > { %3407 = vmatprep.subr.bf16.mxu1 %v3874_v5 }
  0x4b   : > { %2688 = vmatmul.mubr.f32.gmra.mrb[6].mxu0 %v334_v59  ;;  %v1337_v59 = vld [vmem:[%s4719_s2 + $0x8] sm:$0xff] }
  0x4c   : > { %3385 = vmatpush3.bf16.msra.mxu0 %v4062_v29  ;;  %2690 = vmatprep.mubr.f32.mxu0 %v335_v60  ;;  %v4354_v60 = vpack.c.bf16 %v1337_v59, %v1336_v58  ;;  %v1987_v59 = vld [vmem:[%s4722_s5 + $0x20] sm:$0xff] }
  0x4d   : > { %3386 = vmatprep.subr.bf16.mxu0 %v3874_v5  ;;  %3409 = vmatpush3.bf16.msra.mxu1 %v4062_v29 }
  0x4e   : > { %3410 = vmatprep.subr.bf16.mxu1 %v3874_v5 }
  0x4f   : > { %2691 = vmatmul.mubr.f32.gmra.mrb[8].mxu0 %v336_v61 }
  0x50   : > { %3388 = vmatpush3.bf16.msra.mxu0 %v4078_v35  ;;  %2693 = vmatprep.mubr.f32.mxu0 %v337_v62  ;;  %v1431_v62 = vld [vmem:[%s4719_s2 + $0x28] sm:$0xff] }
  0x51   : > { %3389 = vmatprep.subr.bf16.mxu0 %v3874_v5  ;;  %3412 = vmatpush3.bf16.msra.mxu1 %v4078_v35 }
  0x52   : > { %3413 = vmatprep.subr.bf16.mxu1 %v3874_v5 }
  0x53   : > { %2694 = vmatmul.mubr.f32.gmra.mrb[10].mxu0 %v338_v63 }
  0x54   : > { %3391 = vmatpush3.bf16.msra.mxu0 %v4094_v41  ;;  %2696 = vmatprep.mubr.f32.mxu0 %v339_v0  ;;  %v1432_v0 = vld [vmem:[%s4719_s2 + $0x30] sm:$0xff] }
  0x55   : > { %3392 = vmatprep.subr.bf16.mxu0 %v3874_v5  ;;  %3415 = vmatpush3.bf16.msra.mxu1 %v4094_v41 }
  0x56   : > { %3416 = vmatprep.subr.bf16.mxu1 %v3874_v5 }
  0x57   : > { %2697 = vmatmul.mubr.f32.gmra.mrb[12].mxu0 %v340_v1  ;;  %v1433_v1 = vld [vmem:[%s4719_s2 + $0x38] sm:$0xff] }
  0x58   : > { %3394 = vmatpush3.bf16.msra.mxu0 %v4110_v47  ;;  %2699 = vmatprep.mubr.f32.mxu0 %v341_v2  ;;  %v4408_v2 = vpack.c.bf16 %v1433_v1, %v1432_v0  ;;  %v1995_v1 = vld [vmem:[%s4722_s5 + $0x60] sm:$0xff] }
  0x59   : > { %3395 = vmatprep.subr.bf16.mxu0 %v3874_v5  ;;  %3418 = vmatpush3.bf16.msra.mxu1 %v4110_v47 }
  0x5a   : > { %3419 = vmatprep.subr.bf16.mxu1 %v3874_v5 }
  0x5b   : > { %2700 = vmatmul.mubr.f32.gmra.mrb[14].mxu0 %v342_v3  ;;  %v1434_v3 = vld [vmem:[%s4719_s2 + $0x40] sm:$0xff] }
  0x5c   : > { %3397 = vmatpush3.bf16.msra.mxu0 %v4120_v51  ;;  %2769 = vmatprep.mubr.msk.f32.mxu0 %vm3875_vm0, %v3876_v9 }
  0x5d   : > { %3421 = vmatpush3.bf16.msra.mxu1 %v4120_v51  ;;  %3422 = vmatprep.subr.bf16.mxu0 %v3874_v5 }
  0x5e   : > { %3446 = vmatprep.subr.bf16.mxu1 %v3874_v5 }
 0x112   : > { %v2680_v6 = vpop.f32.mrb[0].mxu0  ;;  %v611_v7 = vpop.f32.mrb[0].mxu1 }
 0x113   : > { %v432_v8 = vpop.f32.mrb[1].mxu0  ;;  %v2736_v11 = vpop.f32.mrb[1].mxu1  ;;  %v438_v31 = vadd.f32 %v2680_v6, %v4180_v4  ;;  %v1435_v6 = vld [vmem:[%s4719_s2 + $0x48] sm:$0xff] }
 0x114   : > { %v433_v12 = vadd.f32 %v4180_v4, %v432_v8  ;;  %v1436_v8 = vld [vmem:[%s4719_s2 + $0x50] sm:$0xff]  ;;  %v1437_v11 = vld [vmem:[%s4719_s2 + $0x58] sm:$0xff] }
 0x116   : > { %v612_v13 = vadd.f32 %v611_v7, %v433_v12  ;;  %v4183_v14 = vpop.f32.mrb[2].mxu0  ;;  %v4418_v7 = vpack.c.bf16 %v1435_v6, %v1434_v3  ;;  %v4428_v12 = vpack.c.bf16 %v1437_v11, %v1436_v8  ;;  %v1997_v6 = vld [vmem:[%s4722_s5 + $0x70] sm:$0xff] }
 0x117   : > { %v442_v15 = vpop.f32.mrb[3].mxu0  ;;  %v448_v40 = vadd.f32 %v4183_v14, %v4180_v4  ;;  %v1439_v14 = vld [vmem:[%s4719_s2 + $0x68] sm:$0xff] }
 0x118   : > { %615 = vst [vmem:[%s3985_s26] sm:$0xff] %v612_v13  ;;  %2770 = vmatmul.mubr.f32.vlgmr.msra.gmra.mrb[16].mxu0 %v612_v13  ;;  %v443_v36 = vadd.f32 %v4180_v4, %v442_v15  ;;  %v1438_v13 = vld [vmem:[%s4719_s2 + $0x60] sm:$0xff] }
 0x119   : > { %3424 = vmatpush3.bf16.msra.mxu0 %v4014_v10  ;;  %2839 = vmatprep.mubr.msk.f32.mxu0 %vm3875_vm0, %v3876_v9  ;;  %v4438_v15 = vpack.c.bf16 %v1439_v14, %v1438_v13  ;;  %v2303_v14 = vld [vmem:[%s4723_s6] ss:$0 sm:$0xff] }
 0x11a   : > { %v4189_v17 = vpop.f32.mrb[4].mxu0  ;;  %3425 = vmatprep.subr.bf16.mxu0 %v3874_v5 }
 0x11b   : > { %v4192_v18 = vpop.f32.mrb[5].mxu0  ;;  %v458_v50 = vadd.f32 %v4189_v17, %v4180_v4 }
 0x11c   : > { %v453_v45 = vadd.f32 %v4180_v4, %v4192_v18 }
 0x11d   : > { %3427 = vmatpush3.bf16.msra.mxu0 %v4029_v16 }
 0x11e   : > { %v4195_v19 = vpop.f32.mrb[6].mxu0  ;;  %3428 = vmatprep.subr.bf16.mxu0 %v3874_v5 }
 0x11f   : > { %v4198_v20 = vpop.f32.mrb[7].mxu0 }
 0x121   : > { %3430 = vmatpush3.bf16.msra.mxu0 %v4045_v22 }
 0x122   : > { %v4201_v21 = vpop.f32.mrb[8].mxu0  ;;  %3431 = vmatprep.subr.bf16.mxu0 %v3874_v5 }
 0x123   : > { %v4204_v23 = vpop.f32.mrb[9].mxu0 }
 0x124   : > { %v473_v17 = vadd.f32 %v4180_v4, %v4204_v23  ;;  %v1440_v23 = vld [vmem:[%s4719_s2 + $0x70] sm:$0xff] }
 0x125   : > { %3433 = vmatpush3.bf16.msra.mxu0 %v4062_v29 }
 0x126   : > { %v4207_v24 = vpop.f32.mrb[10].mxu0  ;;  %3434 = vmatprep.subr.bf16.mxu0 %v3874_v5 }
 0x127   : > { %v4210_v25 = vpop.f32.mrb[11].mxu0 }
 0x129   : > { %3436 = vmatpush3.bf16.msra.mxu0 %v4078_v35 }
 0x12a   : > { %v4213_v26 = vpop.f32.mrb[12].mxu0  ;;  %3437 = vmatprep.subr.bf16.mxu0 %v3874_v5 }
 0x12b   : > { %v4216_v27 = vpop.f32.mrb[13].mxu0 }
 0x12d   : > { %3439 = vmatpush3.bf16.msra.mxu0 %v4094_v41 }
 0x12e   : > { %3440 = vmatprep.subr.bf16.mxu0 %v3874_v5  ;;  %v4224_v28 = vpop.f32.mrb[14].mxu0 }
 0x12f   : > { %v4226_v30 = vpop.f32.mrb[15].mxu0 }
 0x131   : > { %3442 = vmatpush3.bf16.msra.mxu0 %v4110_v47 }
 0x132   : > { %3443 = vmatprep.subr.bf16.mxu0 %v3874_v5 }
 0x135   : > { %3445 = vmatpush3.bf16.msra.mxu0 %v4120_v51 }
 0x136   : > { %3470 = vmatprep.subr.bf16.mxu0 %v3874_v5 }
 0x1eb   : > { %v700_v32 = vpop.f32.mrb[16].mxu0 }
 0x1ec   : > { %v701_v33 = vadd.f32 %v700_v32, %v438_v31  ;;  %v2771_v34 = vpop.f32.mrb[17].mxu0  ;;  %v1441_v31 = vld [vmem:[%s4719_s2 + $0x78] sm:$0xff] }
 0x1ed   : > { %v4472_v32 = vpack.c.bf16 %v1441_v31, %v1440_v23 }
 0x1ee   : > { %2288 = vst [vmem:[%s3985_s26 + $0x8] sm:$0xff] %v701_v33  ;;  %2805 = vmatmul.mubr.f32.vlgmr.msra.gmra.mrb[2].mxu1 %v701_v33  ;;  %v478_v33 = vadd.f32 %v4201_v21, %v4180_v4  ;;  %v483_v21 = vadd.f32 %v4180_v4, %v4210_v25  ;;  %v488_v25 = vadd.f32 %v4207_v24, %v4180_v4 }
 0x1ef   : > { %3448 = vmatpush3.bf16.msra.mxu1 %v4014_v10  ;;  %2874 = vmatprep.mubr.msk.f32.mxu1 %vm3875_vm0, %v3876_v9  ;;  %v493_v24 = vadd.f32 %v4180_v4, %v4216_v27  ;;  %v1984_v27 = vld [vmem:[%s4722_s5 + $0x8] sm:$0xff] }
 0x1f0   : > { %3449 = vmatprep.subr.bf16.mxu1 %v3874_v5 }
 0x1f3   : > { %3451 = vmatpush3.bf16.msra.mxu1 %v4029_v16 }
 0x1f4   : > { %3452 = vmatprep.subr.bf16.mxu1 %v3874_v5 }
 0x1f5   : > { %v1968_v11 = vld [vmem:[%s3985_s26 + $0x8] sm:$0xff] }
 0x1f7   : > { %3454 = vmatpush3.bf16.msra.mxu1 %v4045_v22 }
 0x1f8   : > { %3455 = vmatprep.subr.bf16.mxu1 %v3874_v5 }
 0x1fb   : > { %3457 = vmatpush3.bf16.msra.mxu1 %v4062_v29 }
 0x1fc   : > { %3458 = vmatprep.subr.bf16.mxu1 %v3874_v5 }
 0x1ff   : > { %3460 = vmatpush3.bf16.msra.mxu1 %v4078_v35 }
 0x200   : > { %3461 = vmatprep.subr.bf16.mxu1 %v3874_v5 }
 0x203   : > { %3463 = vmatpush3.bf16.msra.mxu1 %v4094_v41 }
 0x204   : > { %3464 = vmatprep.subr.bf16.mxu1 %v3874_v5 }
 0x207   : > { %3466 = vmatpush3.bf16.msra.mxu1 %v4110_v47 }
 0x208   : > { %3467 = vmatprep.subr.bf16.mxu1 %v3874_v5 }
 0x20b   : > { %3469 = vmatpush3.bf16.msra.mxu1 %v4120_v51 }
 0x20c   : > { %3494 = vmatprep.subr.bf16.mxu1 %v3874_v5 }
 0x2c1   : > { %v790_v37 = vpop.f32.mrb[2].mxu1 }
 0x2c2   : > { %v791_v38 = vadd.f32 %v790_v37, %v443_v36  ;;  %v2806_v39 = vpop.f32.mrb[3].mxu1 }
 0x2c4   : > { %2289 = vst [vmem:[%s3985_s26 + $0x10] sm:$0xff] %v791_v38  ;;  %2840 = vmatmul.mubr.f32.vlgmr.msra.gmra.mrb[18].mxu0 %v791_v38 }
 0x2c5   : > { %3472 = vmatpush3.bf16.msra.mxu0 %v4014_v10  ;;  %2909 = vmatprep.mubr.msk.f32.mxu0 %vm3875_vm0, %v3876_v9 }
 0x2c6   : > { %3473 = vmatprep.subr.bf16.mxu0 %v3874_v5 }
 0x2c9   : > { %3475 = vmatpush3.bf16.msra.mxu0 %v4029_v16 }
 0x2ca   : > { %3476 = vmatprep.subr.bf16.mxu0 %v3874_v5 }
 0x2cd   : > { %3478 = vmatpush3.bf16.msra.mxu0 %v4045_v22 }
 0x2ce   : > { %3479 = vmatprep.subr.bf16.mxu0 %v3874_v5 }
 0x2d1   : > { %3481 = vmatpush3.bf16.msra.mxu0 %v4062_v29 }
 0x2d2   : > { %3482 = vmatprep.subr.bf16.mxu0 %v3874_v5 }
 0x2d5   : > { %3484 = vmatpush3.bf16.msra.mxu0 %v4078_v35 }
 0x2d6   : > { %3485 = vmatprep.subr.bf16.mxu0 %v3874_v5 }
 0x2d9   : > { %3487 = vmatpush3.bf16.msra.mxu0 %v4094_v41 }
 0x2da   : > { %3488 = vmatprep.subr.bf16.mxu0 %v3874_v5 }
 0x2dd   : > { %3490 = vmatpush3.bf16.msra.mxu0 %v4110_v47 }
 0x2de   : > { %3491 = vmatprep.subr.bf16.mxu0 %v3874_v5 }
 0x2e1   : > { %3493 = vmatpush3.bf16.msra.mxu0 %v4120_v51 }
 0x2e2   : > { %3518 = vmatprep.subr.bf16.mxu0 %v3874_v5 }
 0x397   : > { %v880_v42 = vpop.f32.mrb[18].mxu0 }
 0x398   : > { %v881_v43 = vadd.f32 %v880_v42, %v448_v40  ;;  %v2841_v44 = vpop.f32.mrb[19].mxu0 }
 0x39a   : > { %2290 = vst [vmem:[%s3985_s26 + $0x18] sm:$0xff] %v881_v43  ;;  %2875 = vmatmul.mubr.f32.vlgmr.msra.gmra.mrb[4].mxu1 %v881_v43 }
 0x39b   : > { %3496 = vmatpush3.bf16.msra.mxu1 %v4014_v10  ;;  %2944 = vmatprep.mubr.msk.f32.mxu1 %vm3875_vm0, %v3876_v9 }
 0x39c   : > { %3497 = vmatprep.subr.bf16.mxu1 %v3874_v5 }
 0x39f   : > { %3499 = vmatpush3.bf16.msra.mxu1 %v4029_v16 }
 0x3a0   : > { %3500 = vmatprep.subr.bf16.mxu1 %v3874_v5 }
 0x3a1   : > { %v1970_v13 = vld [vmem:[%s3985_s26 + $0x18] sm:$0xff] }
 0x3a3   : > { %3502 = vmatpush3.bf16.msra.mxu1 %v4045_v22 }
 0x3a4   : > { %3503 = vmatprep.subr.bf16.mxu1 %v3874_v5 }
 0x3a7   : > { %3505 = vmatpush3.bf16.msra.mxu1 %v4062_v29 }
 0x3a8   : > { %3506 = vmatprep.subr.bf16.mxu1 %v3874_v5 }
 0x3ab   : > { %3508 = vmatpush3.bf16.msra.mxu1 %v4078_v35 }
 0x3ac   : > { %3509 = vmatprep.subr.bf16.mxu1 %v3874_v5 }
 0x3af   : > { %3511 = vmatpush3.bf16.msra.mxu1 %v4094_v41 }
 0x3b0   : > { %3512 = vmatprep.subr.bf16.mxu1 %v3874_v5 }
 0x3b3   : > { %3514 = vmatpush3.bf16.msra.mxu1 %v4110_v47 }
 0x3b4   : > { %3515 = vmatprep.subr.bf16.mxu1 %v3874_v5 }
 0x3b7   : > { %3517 = vmatpush3.bf16.msra.mxu1 %v4120_v51 }
 0x3b8   : > { %3542 = vmatprep.subr.bf16.mxu1 %v3874_v5 }
 0x46d   : > { %v970_v46 = vpop.f32.mrb[4].mxu1 }
 0x46e   : > { %v4291_v48 = vadd.f32 %v970_v46, %v453_v45  ;;  %v2876_v49 = vpop.f32.mrb[5].mxu1 }
 0x470   : > { %2291 = vst [vmem:[%s3985_s26 + $0x20] sm:$0xff] %v4291_v48  ;;  %2910 = vmatmul.mubr.f32.vlgmr.msra.gmra.mrb[20].mxu0 %v4291_v48 }
 0x471   : > { %3520 = vmatpush3.bf16.msra.mxu0 %v4014_v10  ;;  %2979 = vmatprep.mubr.msk.f32.mxu0 %vm3875_vm0, %v3876_v9 }
 0x472   : > { %3521 = vmatprep.subr.bf16.mxu0 %v3874_v5 }
 0x475   : > { %3523 = vmatpush3.bf16.msra.mxu0 %v4029_v16 }
 0x476   : > { %3524 = vmatprep.subr.bf16.mxu0 %v3874_v5 }
 0x479   : > { %3526 = vmatpush3.bf16.msra.mxu0 %v4045_v22 }
 0x47a   : > { %3527 = vmatprep.subr.bf16.mxu0 %v3874_v5 }
 0x47d   : > { %3529 = vmatpush3.bf16.msra.mxu0 %v4062_v29 }
 0x47e   : > { %3530 = vmatprep.subr.bf16.mxu0 %v3874_v5 }
 0x481   : > { %3532 = vmatpush3.bf16.msra.mxu0 %v4078_v35 }
 0x482   : > { %3533 = vmatprep.subr.bf16.mxu0 %v3874_v5 }
 0x485   : > { %3535 = vmatpush3.bf16.msra.mxu0 %v4094_v41 }
 0x486   : > { %3536 = vmatprep.subr.bf16.mxu0 %v3874_v5 }
 0x489   : > { %3538 = vmatpush3.bf16.msra.mxu0 %v4110_v47 }
 0x48a   : > { %3539 = vmatprep.subr.bf16.mxu0 %v3874_v5 }
 0x48d   : > { %3541 = vmatpush3.bf16.msra.mxu0 %v4120_v51 }
 0x48e   : > { %3566 = vmatprep.subr.bf16.mxu0 %v3874_v5 }
 0x543   : > { %v1060_v52 = vpop.f32.mrb[20].mxu0 }
 0x544   : > { %v4316_v53 = vadd.f32 %v1060_v52, %v458_v50  ;;  %v2911_v54 = vpop.f32.mrb[21].mxu0  ;;  %v1985_v52 = vld [vmem:[%s4722_s5 + $0x10] sm:$0xff] }
 0x545   : > { %v498_v54 = vadd.f32 %v4213_v26, %v4180_v4  ;;  %v1989_v26 = vld [vmem:[%s4722_s5 + $0x30] sm:$0xff] }
 0x546   : > { %2292 = vst [vmem:[%s3985_s26 + $0x28] sm:$0xff] %v4316_v53  ;;  %2945 = vmatmul.mubr.f32.vlgmr.msra.gmra.mrb[6].mxu1 %v4316_v53 }
 0x547   : > { %3544 = vmatpush3.bf16.msra.mxu1 %v4014_v10  ;;  %3014 = vmatprep.mubr.msk.f32.mxu1 %vm3875_vm0, %v3876_v9  ;;  %v463_v10 = vadd.f32 %v4180_v4, %v4198_v20 }
 0x548   : > { %3545 = vmatprep.subr.bf16.mxu1 %v3874_v5 }
 0x54b   : > { %3547 = vmatpush3.bf16.msra.mxu1 %v4029_v16 }
 0x54c   : > { %3548 = vmatprep.subr.bf16.mxu1 %v3874_v5 }
 0x54f   : > { %3550 = vmatpush3.bf16.msra.mxu1 %v4045_v22 }
 0x550   : > { %3551 = vmatprep.subr.bf16.mxu1 %v3874_v5 }
 0x553   : > { %3553 = vmatpush3.bf16.msra.mxu1 %v4062_v29 }
 0x554   : > { %3554 = vmatprep.subr.bf16.mxu1 %v3874_v5 }
 0x557   : > { %3556 = vmatpush3.bf16.msra.mxu1 %v4078_v35 }
 0x558   : > { %3557 = vmatprep.subr.bf16.mxu1 %v3874_v5 }
 0x55b   : > { %3559 = vmatpush3.bf16.msra.mxu1 %v4094_v41 }
 0x55c   : > { %3560 = vmatprep.subr.bf16.mxu1 %v3874_v5 }
 0x55f   : > { %3562 = vmatpush3.bf16.msra.mxu1 %v4110_v47 }
 0x560   : > { %3563 = vmatprep.subr.bf16.mxu1 %v3874_v5 }
 0x563   : > { %3565 = vmatpush3.bf16.msra.mxu1 %v4120_v51 }
 0x564   : > { %3590 = vmatprep.subr.bf16.mxu1 %v3874_v5 }
 0x619   : > { %v1150_v55 = vpop.f32.mrb[6].mxu1 }
 0x61a   : > { %v4341_v56 = vadd.f32 %v1150_v55, %v463_v10  ;;  %v2946_v57 = vpop.f32.mrb[7].mxu1 }
 0x61c   : > { %2293 = vst [vmem:[%s3985_s26 + $0x30] sm:$0xff] %v4341_v56  ;;  %2980 = vmatmul.mubr.f32.vlgmr.msra.gmra.mrb[22].mxu0 %v4341_v56 }
 0x61d   : > { %3049 = vmatprep.mubr.msk.f32.mxu0 %vm3875_vm0, %v3876_v9  ;;  %3568 = vmatpush3.bf16.msra.mxu0 %v4354_v60 }
 0x61e   : > { %3569 = vmatprep.subr.bf16.mxu0 %v3874_v5 }
 0x621   : > { %3571 = vmatpush3.bf16.msra.mxu0 %v4029_v16  ;;  %v468_v16 = vadd.f32 %v4195_v19, %v4180_v4 }
 0x622   : > { %3572 = vmatprep.subr.bf16.mxu0 %v3874_v5 }
 0x625   : > { %3574 = vmatpush3.bf16.msra.mxu0 %v4045_v22 }
 0x626   : > { %3575 = vmatprep.subr.bf16.mxu0 %v3874_v5 }
 0x629   : > { %3577 = vmatpush3.bf16.msra.mxu0 %v4062_v29 }
 0x62a   : > { %3578 = vmatprep.subr.bf16.mxu0 %v3874_v5 }
 0x62d   : > { %3580 = vmatpush3.bf16.msra.mxu0 %v4078_v35 }
 0x62e   : > { %3581 = vmatprep.subr.bf16.mxu0 %v3874_v5 }
 0x631   : > { %3583 = vmatpush3.bf16.msra.mxu0 %v4094_v41  ;;  %v1428_v41 = vld [vmem:[%s4719_s2 + $0x10] sm:$0xff] }
 0x632   : > { %3584 = vmatprep.subr.bf16.mxu0 %v3874_v5 }
 0x635   : > { %3586 = vmatpush3.bf16.msra.mxu0 %v4110_v47  ;;  %v1429_v47 = vld [vmem:[%s4719_s2 + $0x18] sm:$0xff] }
 0x636   : > { %3587 = vmatprep.subr.bf16.mxu0 %v3874_v5  ;;  %v4392_v61 = vpack.c.bf16 %v1429_v47, %v1428_v41  ;;  %v1991_v47 = vld [vmem:[%s4722_s5 + $0x40] sm:$0xff] }
 0x639   : > { %3589 = vmatpush3.bf16.msra.mxu0 %v4120_v51  ;;  %v1430_v51 = vld [vmem:[%s4719_s2 + $0x20] sm:$0xff] }
 0x63a   : > { %3614 = vmatprep.subr.bf16.mxu0 %v3874_v5  ;;  %v4398_v63 = vpack.c.bf16 %v1431_v62, %v1430_v51  ;;  %v1992_v51 = vld [vmem:[%s4722_s5 + $0x48] sm:$0xff]  ;;  %v1993_v62 = vld [vmem:[%s4722_s5 + $0x50] sm:$0xff] }
 0x6ef   : > { %v1240_v22 = vpop.f32.mrb[22].mxu0 }
 0x6f0   : > { %v4374_v29 = vadd.f32 %v1240_v22, %v468_v16  ;;  %v2981_v35 = vpop.f32.mrb[23].mxu0  ;;  %v1967_v16 = vld [vmem:[%s3985_s26] sm:$0xff] }
 0x6f1   : > { %v1990_v35 = vld [vmem:[%s4722_s5 + $0x38] sm:$0xff] }
 0x6f2   : > { %2294 = vst [vmem:[%s3985_s26 + $0x38] sm:$0xff] %v4374_v29  ;;  %3015 = vmatmul.mubr.f32.vlgmr.msra.gmra.mrb[8].mxu1 %v4374_v29  ;;  %v3746_v41 = vpack.c.bf16 %v1990_v35, %v1989_v26 }
 0x6f3   : > { %3592 = vmatpush3.bf16.msra.mxu1 %v4354_v60  ;;  %3084 = vmatprep.mubr.msk.f32.mxu1 %vm3875_vm0, %v3876_v9 }
 0x6f4   : > { %3593 = vmatprep.subr.bf16.mxu1 %v3874_v5 }
 0x6f7   : > { %3595 = vmatpush3.bf16.msra.mxu1 %v4392_v61 }
 0x6f8   : > { %3596 = vmatprep.subr.bf16.mxu1 %v3874_v5 }
 0x6fb   : > { %3598 = vmatpush3.bf16.msra.mxu1 %v4398_v63 }
 0x6fc   : > { %3599 = vmatprep.subr.bf16.mxu1 %v3874_v5 }
 0x6ff   : > { %3601 = vmatpush3.bf16.msra.mxu1 %v4408_v2 }
 0x700   : > { %3602 = vmatprep.subr.bf16.mxu1 %v3874_v5 }
 0x703   : > { %3604 = vmatpush3.bf16.msra.mxu1 %v4418_v7 }
 0x704   : > { %3605 = vmatprep.subr.bf16.mxu1 %v3874_v5 }
 0x707   : > { %3607 = vmatpush3.bf16.msra.mxu1 %v4428_v12 }
 0x708   : > { %3608 = vmatprep.subr.bf16.mxu1 %v3874_v5 }
 0x70b   : > { %3610 = vmatpush3.bf16.msra.mxu1 %v4438_v15 }
 0x70c   : > { %3611 = vmatprep.subr.bf16.mxu1 %v3874_v5 }
 0x70f   : > { %3613 = vmatpush3.bf16.msra.mxu1 %v4472_v32 }
 0x710   : > { %3638 = vmatprep.subr.bf16.mxu1 %v3874_v5 }
 0x7c5   : > { %v1330_v18 = vpop.f32.mrb[8].mxu1 }
 0x7c6   : > { %v4445_v19 = vadd.f32 %v1330_v18, %v473_v17  ;;  %v3016_v20 = vpop.f32.mrb[9].mxu1 }
 0x7c8   : > { %2295 = vst [vmem:[%s3985_s26 + $0x40] sm:$0xff] %v4445_v19  ;;  %3050 = vmatmul.mubr.f32.vlgmr.msra.gmra.mrb[24].mxu0 %v4445_v19 }
 0x7c9   : > { %3616 = vmatpush3.bf16.msra.mxu0 %v4354_v60  ;;  %3119 = vmatprep.mubr.msk.f32.mxu0 %vm3875_vm0, %v3876_v9 }
 0x7ca   : > { %3617 = vmatprep.subr.bf16.mxu0 %v3874_v5 }
 0x7cd   : > { %3619 = vmatpush3.bf16.msra.mxu0 %v4392_v61 }
 0x7ce   : > { %3620 = vmatprep.subr.bf16.mxu0 %v3874_v5 }
 0x7d1   : > { %3622 = vmatpush3.bf16.msra.mxu0 %v4398_v63 }
 0x7d2   : > { %3623 = vmatprep.subr.bf16.mxu0 %v3874_v5 }
 0x7d5   : > { %3625 = vmatpush3.bf16.msra.mxu0 %v4408_v2 }
 0x7d6   : > { %3626 = vmatprep.subr.bf16.mxu0 %v3874_v5 }
 0x7d9   : > { %3628 = vmatpush3.bf16.msra.mxu0 %v4418_v7 }
 0x7da   : > { %3629 = vmatprep.subr.bf16.mxu0 %v3874_v5 }
 0x7dd   : > { %3631 = vmatpush3.bf16.msra.mxu0 %v4428_v12 }
 0x7de   : > { %3632 = vmatprep.subr.bf16.mxu0 %v3874_v5 }
 0x7e1   : > { %3634 = vmatpush3.bf16.msra.mxu0 %v4438_v15 }
 0x7e2   : > { %3635 = vmatprep.subr.bf16.mxu0 %v3874_v5 }
 0x7e5   : > { %3637 = vmatpush3.bf16.msra.mxu0 %v4472_v32 }
 0x7e6   : > { %3662 = vmatprep.subr.bf16.mxu0 %v3874_v5 }
 0x89b   : > { %v1420_v34 = vpop.f32.mrb[24].mxu0 }
 0x89c   : > { %v4480_v36 = vadd.f32 %v1420_v34, %v478_v33  ;;  %v3051_v37 = vpop.f32.mrb[25].mxu0 }
 0x89e   : > { %2296 = vst [vmem:[%s3985_s26 + $0x48] sm:$0xff] %v4480_v36  ;;  %3085 = vmatmul.mubr.f32.vlgmr.msra.gmra.mrb[10].mxu1 %v4480_v36 }
 0x89f   : > { %3640 = vmatpush3.bf16.msra.mxu1 %v4354_v60  ;;  %3154 = vmatprep.mubr.msk.f32.mxu1 %vm3875_vm0, %v3876_v9 }
 0x8a0   : > { %3641 = vmatprep.subr.bf16.mxu1 %v3874_v5 }
 0x8a3   : > { %3643 = vmatpush3.bf16.msra.mxu1 %v4392_v61 }
 0x8a4   : > { %3644 = vmatprep.subr.bf16.mxu1 %v3874_v5 }
 0x8a7   : > { %3646 = vmatpush3.bf16.msra.mxu1 %v4398_v63 }
 0x8a8   : > { %3647 = vmatprep.subr.bf16.mxu1 %v3874_v5 }
 0x8ab   : > { %3649 = vmatpush3.bf16.msra.mxu1 %v4408_v2 }
 0x8ac   : > { %3650 = vmatprep.subr.bf16.mxu1 %v3874_v5 }
 0x8af   : > { %3652 = vmatpush3.bf16.msra.mxu1 %v4418_v7 }
 0x8b0   : > { %3653 = vmatprep.subr.bf16.mxu1 %v3874_v5 }
 0x8b3   : > { %3655 = vmatpush3.bf16.msra.mxu1 %v4428_v12 }
 0x8b4   : > { %3656 = vmatprep.subr.bf16.mxu1 %v3874_v5 }
 0x8b7   : > { %3658 = vmatpush3.bf16.msra.mxu1 %v4438_v15 }
 0x8b8   : > { %3659 = vmatprep.subr.bf16.mxu1 %v3874_v5 }
 0x8bb   : > { %3661 = vmatpush3.bf16.msra.mxu1 %v4472_v32 }
 0x8bc   : > { %3686 = vmatprep.subr.bf16.mxu1 %v3874_v5 }
 0x971   : > { %v1510_v38 = vpop.f32.mrb[10].mxu1 }
 0x972   : > { %v4505_v39 = vadd.f32 %v1510_v38, %v483_v21  ;;  %v3086_v40 = vpop.f32.mrb[11].mxu1 }
 0x974   : > { %2297 = vst [vmem:[%s3985_s26 + $0x50] sm:$0xff] %v4505_v39  ;;  %3120 = vmatmul.mubr.f32.vlgmr.msra.gmra.mrb[26].mxu0 %v4505_v39 }
 0x975   : > { %3664 = vmatpush3.bf16.msra.mxu0 %v4354_v60  ;;  %3189 = vmatprep.mubr.msk.f32.mxu0 %vm3875_vm0, %v3876_v9 }
 0x976   : > { %3665 = vmatprep.subr.bf16.mxu0 %v3874_v5 }
 0x979   : > { %3667 = vmatpush3.bf16.msra.mxu0 %v4392_v61 }
 0x97a   : > { %3668 = vmatprep.subr.bf16.mxu0 %v3874_v5 }
 0x97d   : > { %3670 = vmatpush3.bf16.msra.mxu0 %v4398_v63 }
 0x97e   : > { %3671 = vmatprep.subr.bf16.mxu0 %v3874_v5 }
 0x981   : > { %3673 = vmatpush3.bf16.msra.mxu0 %v4408_v2 }
 0x982   : > { %3674 = vmatprep.subr.bf16.mxu0 %v3874_v5 }
 0x985   : > { %3676 = vmatpush3.bf16.msra.mxu0 %v4418_v7 }
 0x986   : > { %3677 = vmatprep.subr.bf16.mxu0 %v3874_v5 }
 0x989   : > { %3679 = vmatpush3.bf16.msra.mxu0 %v4428_v12 }
 0x98a   : > { %3680 = vmatprep.subr.bf16.mxu0 %v3874_v5 }
 0x98d   : > { %3682 = vmatpush3.bf16.msra.mxu0 %v4438_v15 }
 0x98e   : > { %3683 = vmatprep.subr.bf16.mxu0 %v3874_v5 }
 0x991   : > { %3685 = vmatpush3.bf16.msra.mxu0 %v4472_v32 }
 0x992   : > { %3710 = vmatprep.subr.bf16.mxu0 %v3874_v5 }
 0xa47   : > { %v1600_v42 = vpop.f32.mrb[26].mxu0 }
 0xa48   : > { %v4530_v43 = vadd.f32 %v1600_v42, %v488_v25  ;;  %v3121_v44 = vpop.f32.mrb[27].mxu0 }
 0xa4a   : > { %2298 = vst [vmem:[%s3985_s26 + $0x58] sm:$0xff] %v4530_v43  ;;  %3155 = vmatmul.mubr.f32.vlgmr.msra.gmra.mrb[12].mxu1 %v4530_v43 }
 0xa4b   : > { %3688 = vmatpush3.bf16.msra.mxu1 %v4354_v60  ;;  %3224 = vmatprep.mubr.msk.f32.mxu1 %vm3875_vm0, %v3876_v9 }
 0xa4c   : > { %3689 = vmatprep.subr.bf16.mxu1 %v3874_v5 }
 0xa4f   : > { %3691 = vmatpush3.bf16.msra.mxu1 %v4392_v61 }
 0xa50   : > { %3692 = vmatprep.subr.bf16.mxu1 %v3874_v5 }
 0xa53   : > { %3694 = vmatpush3.bf16.msra.mxu1 %v4398_v63 }
 0xa54   : > { %3695 = vmatprep.subr.bf16.mxu1 %v3874_v5 }
 0xa57   : > { %3697 = vmatpush3.bf16.msra.mxu1 %v4408_v2 }
 0xa58   : > { %3698 = vmatprep.subr.bf16.mxu1 %v3874_v5 }
 0xa5b   : > { %3700 = vmatpush3.bf16.msra.mxu1 %v4418_v7 }
 0xa5c   : > { %3701 = vmatprep.subr.bf16.mxu1 %v3874_v5 }
 0xa5f   : > { %3703 = vmatpush3.bf16.msra.mxu1 %v4428_v12 }
 0xa60   : > { %3704 = vmatprep.subr.bf16.mxu1 %v3874_v5 }
 0xa63   : > { %3706 = vmatpush3.bf16.msra.mxu1 %v4438_v15 }
 0xa64   : > { %3707 = vmatprep.subr.bf16.mxu1 %v3874_v5 }
 0xa67   : > { %3709 = vmatpush3.bf16.msra.mxu1 %v4472_v32 }
 0xb1d   : > { %v1690_v45 = vpop.f32.mrb[12].mxu1 }
 0xb1e   : > { %v4554_v46 = vadd.f32 %v1690_v45, %v493_v24  ;;  %v3156_v49 = vpop.f32.mrb[13].mxu1 }
 0xb20   : > { %2299 = vst [vmem:[%s3985_s26 + $0x60] sm:$0xff] %v4554_v46  ;;  %3190 = vmatmul.mubr.f32.vlgmr.msra.gmra.mrb[28].mxu0 %v4554_v46 }
 0xb21   : > { %3712 = vmatpush3.bf16.msra.mxu0 %v4354_v60  ;;  %3259 = vmatprep.mubr.msk.f32.mxu0 %vm3875_vm0, %v3876_v9  ;;  %v1983_v9 = vld [vmem:[%s4722_s5] sm:$0xff]  ;;  %v1988_v60 = vld [vmem:[%s4722_s5 + $0x28] sm:$0xff] }
 0xb22   : > { %3713 = vmatprep.subr.bf16.mxu0 %v3874_v5  ;;  %v3734_v50 = vpack.c.bf16 %v1984_v27, %v1983_v9  ;;  %v3742_v22 = vpack.c.bf16 %v1988_v60, %v1987_v59 }
 0xb24   : > { %3735 = vmatprep.subr.bf16.mxu1 %v3734_v50 }
 0xb25   : > { %3715 = vmatpush3.bf16.msra.mxu0 %v4392_v61  ;;  %v3750_v61 = vpack.c.bf16 %v1992_v51, %v1991_v47 }
 0xb26   : > { %3716 = vmatprep.subr.bf16.mxu0 %v3874_v5 }
 0xb29   : > { %3718 = vmatpush3.bf16.msra.mxu0 %v4398_v63  ;;  %v1994_v63 = vld [vmem:[%s4722_s5 + $0x58] sm:$0xff] }
 0xb2a   : > { %3719 = vmatprep.subr.bf16.mxu0 %v3874_v5  ;;  %v3754_v0 = vpack.c.bf16 %v1994_v63, %v1993_v62 }
 0xb2d   : > { %3721 = vmatpush3.bf16.msra.mxu0 %v4408_v2  ;;  %v1996_v2 = vld [vmem:[%s4722_s5 + $0x68] sm:$0xff] }
 0xb2e   : > { %3722 = vmatprep.subr.bf16.mxu0 %v3874_v5  ;;  %v3758_v3 = vpack.c.bf16 %v1996_v2, %v1995_v1 }
 0xb31   : > { %3724 = vmatpush3.bf16.msra.mxu0 %v4418_v7  ;;  %v1998_v7 = vld [vmem:[%s4722_s5 + $0x78] sm:$0xff] }
 0xb32   : > { %3725 = vmatprep.subr.bf16.mxu0 %v3874_v5  ;;  %v3762_v8 = vpack.c.bf16 %v1998_v7, %v1997_v6 }
 0xb35   : > { %3727 = vmatpush3.bf16.msra.mxu0 %v4428_v12  ;;  %v1969_v12 = vld [vmem:[%s3985_s26 + $0x10] sm:$0xff] }
 0xb36   : > { %3728 = vmatprep.subr.bf16.mxu0 %v3874_v5 }
 0xb39   : > { %3730 = vmatpush3.bf16.msra.mxu0 %v4438_v15 }
 0xb3a   : > { %3731 = vmatprep.subr.bf16.mxu0 %v3874_v5  ;;  %v1986_v5 = vld [vmem:[%s4722_s5 + $0x18] sm:$0xff] }
 0xb3b   : > { %v3738_v58 = vpack.c.bf16 %v1986_v5, %v1985_v52  ;;  %v508_v52 = vadd.f32 %v4224_v28, %v4180_v4 }
 0xb3d   : > { %3733 = vmatpush3.bf16.msra.mxu0 %v4472_v32 }
 0xbf3   : > { %v1780_v10 = vpop.f32.mrb[28].mxu0 }
 0xbf4   : > { %v1781_v55 = vadd.f32 %v1780_v10, %v498_v54  ;;  %v3191_v57 = vpop.f32.mrb[29].mxu0 }
 0xbf6   : > { %2300 = vst [vmem:[%s3985_s26 + $0x68] sm:$0xff] %v1781_v55  ;;  %3225 = vmatmul.mubr.f32.vlgmr.msra.gmra.mrb[14].mxu1 %v1781_v55 }
 0xbf7   : > { %3737 = vmatpush3.bf16.msra.mxu1 %v3734_v50  ;;  %3294 = vmatprep.mubr.f32.mxu1 %v1967_v16 }
 0xbf8   : > { %3739 = vmatprep.subr.bf16.mxu1 %v3738_v58 }
 0xbfb   : > { %3741 = vmatpush3.bf16.msra.mxu1 %v3738_v58 }
 0xbfc   : > { %3743 = vmatprep.subr.bf16.mxu1 %v3742_v22 }
 0xbff   : > { %3745 = vmatpush3.bf16.msra.mxu1 %v3742_v22 }
 0xc00   : > { %3747 = vmatprep.subr.bf16.mxu1 %v3746_v41 }
 0xc03   : > { %3749 = vmatpush3.bf16.msra.mxu1 %v3746_v41 }
 0xc04   : > { %3751 = vmatprep.subr.bf16.mxu1 %v3750_v61 }
 0xc07   : > { %3753 = vmatpush3.bf16.msra.mxu1 %v3750_v61 }
 0xc08   : > { %3755 = vmatprep.subr.bf16.mxu1 %v3754_v0 }
 0xc0b   : > { %3757 = vmatpush3.bf16.msra.mxu1 %v3754_v0 }
 0xc0c   : > { %3759 = vmatprep.subr.bf16.mxu1 %v3758_v3 }
 0xc0f   : > { %3761 = vmatpush3.bf16.msra.mxu1 %v3758_v3 }
 0xc10   : > { %3763 = vmatprep.subr.bf16.mxu1 %v3762_v8 }
 0xc13   : > { %3765 = vmatpush3.bf16.msra.mxu1 %v3762_v8 }
 0xc16   : > { %3295 = vmatmul.mubr.f32.vlgmr.msra.gmra.mrb[16].mxu1 %v1968_v11 }
 0xc17   : > { %3297 = vmatprep.mubr.f32.mxu1 %v1969_v12 }
 0xc1a   : > { %3298 = vmatmul.mubr.f32.gmra.mrb[18].mxu1 %v1970_v13 }
 0xc1b   : > { %3300 = vmatprep.mubr.f32.mxu1 %v4291_v48  ;;  %v503_v48 = vadd.f32 %v4180_v4, %v4226_v30 }
 0xc1e   : > { %3301 = vmatmul.mubr.f32.gmra.mrb[20].mxu1 %v4316_v53 }
 0xc1f   : > { %3303 = vmatprep.mubr.f32.mxu1 %v4341_v56 }
 0xc22   : > { %3304 = vmatmul.mubr.f32.gmra.mrb[22].mxu1 %v4374_v29 }
 0xc23   : > { %3306 = vmatprep.mubr.f32.mxu1 %v4445_v19 }
 0xc26   : > { %3307 = vmatmul.mubr.f32.gmra.mrb[24].mxu1 %v4480_v36 }
 0xc27   : > { %3309 = vmatprep.mubr.f32.mxu1 %v4505_v39 }
 0xc2a   : > { %3310 = vmatmul.mubr.f32.gmra.mrb[26].mxu1 %v4530_v43 }
 0xc2b   : > { %3312 = vmatprep.mubr.f32.mxu1 %v4554_v46 }
 0xc2e   : > { %3313 = vmatmul.mubr.f32.gmra.mrb[28].mxu1 %v1781_v55 }
 0xcc9   : > { %v1870_v53 = vpop.f32.mrb[14].mxu1 }
 0xcca   : > { %v1871_v56 = vadd.f32 %v1870_v53, %v503_v48  ;;  %v3226_v29 = vpop.f32.mrb[15].mxu1 }
 0xccc   : > { %2301 = vst [vmem:[%s3985_s26 + $0x70] sm:$0xff] %v1871_v56  ;;  %3260 = vmatmul.mubr.f32.vlgmr.msra.gmra.mrb[30].mxu0 %v1871_v56  ;;  %3315 = vmatprep.mubr.f32.mxu1 %v1871_v56 }
 0xce9   : > { %v3296_v15 = vpop.f32.mrb[16].mxu1 }
 0xcea   : > { %v2078_v17 = vadd.f32 %v3296_v15, %v2303_v14  ;;  %v2072_v18 = vpop.f32.mrb[17].mxu1 }
 0xceb   : > { %v2073_v19 = vadd.f32 %v2303_v14, %v2072_v18 }
 0xcec   : > { %2152 = vst [vmem:[%s3987_s10 + $0x8] sm:$0xff] %v2078_v17 }
 0xced   : > { %2151 = vst [vmem:[%s3987_s10] sm:$0xff] %v2073_v19  ;;  %v3299_v30 = vpop.f32.mrb[18].mxu1 }
 0xcee   : > { %v2088_v20 = vadd.f32 %v3299_v30, %v2303_v14  ;;  %v2082_v23 = vpop.f32.mrb[19].mxu1 }
 0xcef   : > { %v2083_v31 = vadd.f32 %v2303_v14, %v2082_v23 }
 0xcf0   : > { %2154 = vst [vmem:[%s3987_s10 + $0x18] sm:$0xff] %v2088_v20 }
 0xcf1   : > { %2153 = vst [vmem:[%s3987_s10 + $0x10] sm:$0xff] %v2083_v31  ;;  %v3302_v32 = vpop.f32.mrb[20].mxu1 }
 0xcf2   : > { %v2098_v33 = vadd.f32 %v3302_v32, %v2303_v14  ;;  %v2092_v34 = vpop.f32.mrb[21].mxu1 }
 0xcf3   : > { %v2093_v36 = vadd.f32 %v2303_v14, %v2092_v34 }
 0xcf4   : > { %2156 = vst [vmem:[%s3987_s10 + $0x28] sm:$0xff] %v2098_v33 }
 0xcf5   : > { %2155 = vst [vmem:[%s3987_s10 + $0x20] sm:$0xff] %v2093_v36  ;;  %v3305_v37 = vpop.f32.mrb[22].mxu1 }
 0xcf6   : > { %v2108_v21 = vadd.f32 %v3305_v37, %v2303_v14  ;;  %v2102_v38 = vpop.f32.mrb[23].mxu1 }
 0xcf7   : > { %v2103_v39 = vadd.f32 %v2303_v14, %v2102_v38 }
 0xcf8   : > { %2158 = vst [vmem:[%s3987_s10 + $0x38] sm:$0xff] %v2108_v21 }
 0xcf9   : > { %2157 = vst [vmem:[%s3987_s10 + $0x30] sm:$0xff] %v2103_v39  ;;  %v3308_v40 = vpop.f32.mrb[24].mxu1 }
 0xcfa   : > { %v2118_v25 = vadd.f32 %v3308_v40, %v2303_v14  ;;  %v2112_v42 = vpop.f32.mrb[25].mxu1 }
 0xcfb   : > { %v2113_v43 = vadd.f32 %v2303_v14, %v2112_v42 }
 0xcfc   : > { %2160 = vst [vmem:[%s3987_s10 + $0x48] sm:$0xff] %v2118_v25 }
 0xcfd   : > { %2159 = vst [vmem:[%s3987_s10 + $0x40] sm:$0xff] %v2113_v43  ;;  %v3311_v44 = vpop.f32.mrb[26].mxu1 }
 0xcfe   : > { %v2128_v24 = vadd.f32 %v3311_v44, %v2303_v14  ;;  %v2122_v45 = vpop.f32.mrb[27].mxu1 }
 0xcff   : > { %v2123_v46 = vadd.f32 %v2303_v14, %v2122_v45 }
 0xd00   : > { %2162 = vst [vmem:[%s3987_s10 + $0x58] sm:$0xff] %v2128_v24 }
 0xd01   : > { %2161 = vst [vmem:[%s3987_s10 + $0x50] sm:$0xff] %v2123_v46  ;;  %v3314_v49 = vpop.f32.mrb[28].mxu1 }
 0xd02   : > { %v2138_v9 = vadd.f32 %v3314_v49, %v2303_v14  ;;  %v2132_v27 = vpop.f32.mrb[29].mxu1 }
 0xd03   : > { %v2133_v50 = vadd.f32 %v2303_v14, %v2132_v27 }
 0xd04   : > { %2164 = vst [vmem:[%s3987_s10 + $0x68] sm:$0xff] %v2138_v9 }
 0xd05   : > { %2163 = vst [vmem:[%s3987_s10 + $0x60] sm:$0xff] %v2133_v50 }
 0xd9f   : > { %v1960_v5 = vpop.f32.mrb[30].mxu0 }
 0xda0   : > { %v1961_v54 = vadd.f32 %v1960_v5, %v508_v52  ;;  %v3261_v10 = vpop.f32.mrb[31].mxu0 }
 0xda2   : > { %2302 = vst [vmem:[%s3985_s26 + $0x78] sm:$0xff] %v1961_v54  ;;  %1966 = vst [vmem:[#allocation2] sm:$0xff] %v1961_v54  ;;  %3316 = vmatmul.mubr.f32.gmra.mrb[30].mxu1 %v1961_v54  ;;  %s4729_s26 = sand.u32 1, %s3864_s28  }
 0xda3   : > { %s4676_s18 = scalar_lea.sflag [#allocation5], %s4729_s26 }
 0xe75   : > { %v3317_v55 = vpop.f32.mrb[30].mxu1 }
 0xe76   : > { %v2148_v57 = vadd.f32 %v3317_v55, %v2303_v14  ;;  %v2142_v58 = vpop.f32.mrb[31].mxu1 }
 0xe77   : > { %v2143_v4 = vadd.f32 %v2303_v14, %v2142_v58 }
 0xe78   : > { %2166 = vst [vmem:[%s3987_s10 + $0x78] sm:$0xff] %v2148_v57 }
 0xe79   : > { %2165 = vst [vmem:[%s3987_s10 + $0x70] sm:$0xff] %v2143_v4 }
 0xe7a   : > { %3823 = shalt.err (!%p3820_p4)
}
 0xe7b   : > { %s3824_s10 = scalar_lea.hbm %s4668_s13, 2048  ;;  %s3828_s23 = scalar_lea.hbm %s4725_s8, 4096 }
 0xe7c   : > { %p3825_p7 = scmp.ne.s32.totalorder %s4668_s13, %s3824_s10  ;;  %p3829_p10 = scmp.lt.u32.totalorder %s4668_s13, %s4725_s8 }
 0xe7d   : > { %p3830_p11 = scmp.lt.u32.totalorder %s3828_s23, %s3824_s10  ;;  %p3832_p13 = scmp.lt.u32.totalorder %s3824_s10, %s4668_s13 }
 0xe7e   : > { %p3826_p8 = pnand %p3825_p7, %p3963_p5 }
 0xe7f   : > { %p3831_p12 = por %p3830_p11, %p3829_p10 }
 0xe80   : > { %p3827_p9 = pneg %p3826_p8 }
 0xe81   : > { %p3833_p0 = por %p3832_p13, %p3831_p12 }
 0xe83   : > { %p3834_p1 = pnand %p3833_p0, %p3827_p9 }
 0xe85   : > { %3837 = shalt.err (!%p3834_p1)
}
 0xe86   : > { %s3878_s26 = smov 128   ;;  %s3879_s9 = smov 8  }
 0xe87   : > { %3766 = dma.vmem_to_hbm [thread:$0]  (%p3963_p5), %s4670_s24, 2048, %s4668_s13, %s4676_s18, %s3878_s26, %s3878_s26, %s3879_s9  }
 0xe88 PF: > { %p3772_p2 = scmp.ge.s32.totalorder %s3872_s30, 2  ;;  %s2213_s21 = sand.u32 1, %s3860_s27  }
 0xe89   : > { %s2214_s17 = scalar_lea.sflag [#allocation5], %s2213_s21 }
 0xe8a   : > { %p3769_p3 = pnand %p3772_p2, %p3967_p6 }
 0xe8c   : > { %3855 = dma.done.wait (!%p3769_p3), %s2214_s17, 2048  }
 0xe8d   : > { %3857 = vsyncadd (!%p3769_p3), %s2214_s17, 4294965248  ;;  %p19_p4 = scmp.ge.s32.totalorder %s3950_s11, 4   ;;  %s4730_s27 = smov %s3864_s28 }
 0xe8e   : > { %s4731_s28 = smov %s3868_s29  ;;  %s4732_s29 = smov %s3961_s14 }
 0xe8f   : > { %s4733_s30 = smov %s3950_s11  ;;  %21 = sbr.rel (!%p19_p4) target bundleno = 3 (0x3), region = 129 }
 0xe96   :  { %2219 = vsyncpa [#allocation5], 1 }
 0xe97   :  { %2221 = vsyncpa [#allocation5 + $0x1], 1 }

</bundles_post_ra>
